<compile_context>
chip_gen: v5e
topology: v5e:2x2
jax: 0.10.0
libtpu: 0.0.40
codegen_flags: <defaults>
</compile_context>

<pallas_src>
import math

import jax
import jax.numpy as jnp
import numpy as np
from jax.experimental import pallas as pl
from jax.experimental.pallas import tpu as pltpu  # noqa: F401  (TPU backend)

# ---------------- config (small, consistent with the module) ----------------
SEQ_VOCAB_SIZES = (10, 12)     # one vocab per input sequence
OUTPUT_SEQ_DIMS = (10, 12)     # lm_head output split sizes
N_EMBD = 32
N_HEAD = 4
N_LAYER = 2
N_POSITIONS = 8
LN_EPS = 1e-5
INIT_RANGE = 0.02
HEAD_DIM = N_EMBD // N_HEAD
SUM_OUT = sum(OUTPUT_SEQ_DIMS)
LANE = 128                     # lane-dense padded width (multiple of 128)

# Safe here (small-init weights, masked scores = -1e4 underflow in exp).
# Set to True for arbitrary trained checkpoints (numerical-stability guard).
SUBTRACT_ROW_MAX = False


# ---------------- in-kernel helpers ----------------
def _layernorm(h, w, b, eps=LN_EPS):
    mu = jnp.mean(h, axis=-1, keepdims=True)
    var = jnp.mean((h - mu) ** 2, axis=-1, keepdims=True)
    return (h - mu) * jax.lax.rsqrt(var + eps) * w + b


def _gelu_new(x):
    # GPT-2 "gelu_new" activation
    return 0.5 * x * (1.0 + jnp.tanh(math.sqrt(2.0 / math.pi) *
                                     (x + 0.044715 * x ** 3)))


# ---------------- fused Pallas kernel ----------------
def fused_gpt2_kernel(x_ref, bias_ref, wide_ref, narrow_ref, vec_ref, final_ref,
                      out_ref):
    """Entire GPT2Encoder trunk: N_LAYER blocks + ln_f + (padded) lm_head.

    Operand layout (all float32):
      x_ref      (B*S, 32)          flattened hidden states
      bias_ref   (B*S, B*S)         additive attention bias (0 / -1e4),
                                    block-diagonal causal over the batch
      wide_ref   (N_LAYER, 64, 128) rows 0:32 = c_attn W padded to 128 lanes
                                    (q-part pre-scaled by 1/sqrt(head_dim)),
                                    rows 32:64 = MLP c_fc W (32,128)
      narrow_ref (N_LAYER, 160, 32) rows 0:32 = attn c_proj W (32,32),
                                    rows 32:160 = MLP c_proj W (128,32)
      vec_ref    (N_LAYER, 4, 128)  row0 = ln1_w|ln1_b|ln2_w|ln2_b
                                    row1 = attn_proj_b|mlp_proj_b|0|0
                                    row2 = c_attn bias padded (q pre-scaled)
                                    row3 = c_fc bias
      final_ref  (34, 128)          rows 0:32 = lm_head W^T padded,
                                    row 32 = lnf_w|lnf_b|0|0, row 33 = lm_b pad
      out_ref    (B*S, 128)         padded logits (cols >= SUM_OUT are junk)
    """
    d, dh = N_EMBD, HEAD_DIM
    x = x_ref[...]                            # (B*S, 32)
    attn_bias = bias_ref[...]                 # (B*S, B*S)

    for layer in range(N_LAYER):              # static unroll (N_LAYER=2)
        vec = vec_ref[layer]                  # (4, 128)
        ln1_w, ln1_b = vec[0:1, 0:d], vec[0:1, d:2 * d]
        ln2_w, ln2_b = vec[0:1, 2 * d:3 * d], vec[0:1, 3 * d:4 * d]
        proj_b, mp_b = vec[1:2, 0:d], vec[1:2, d:2 * d]
        qkv_b = vec[2:3, :]                   # (1, 128)
        fc_b = vec[3:4, :]                    # (1, 128)

        ww = wide_ref[layer]                  # (64, 128)
        qkv_w, fc_w = ww[0:d, :], ww[d:2 * d, :]
        nw = narrow_ref[layer]                # (160, 32)
        proj_w, mp_w = nw[0:d, :], nw[d:5 * d, :]

        # ---- attention branch ----
        h = _layernorm(x, ln1_w, ln1_b)
        # One lane-dense c_attn matmul for all heads' Q/K/V (q pre-scaled).
        qkv = jnp.dot(h, qkv_w, preferred_element_type=jnp.float32) + qkv_b
        heads = []
        for hd in range(N_HEAD):              # static unroll (N_HEAD=4)
            q = qkv[:, hd * dh:(hd + 1) * dh]
            k = qkv[:, d + hd * dh:d + (hd + 1) * dh]
            v = qkv[:, 2 * d + hd * dh:2 * d + (hd + 1) * dh]
            s = jnp.dot(q, k.T, preferred_element_type=jnp.float32) + attn_bias
            if SUBTRACT_ROW_MAX:
                s = s - jnp.max(s, axis=-1, keepdims=True)
            e = jnp.exp(s)
            p = e * pl.reciprocal(jnp.sum(e, axis=-1, keepdims=True), approx=True)
            heads.append(jnp.dot(p, v, preferred_element_type=jnp.float32))
        # Pack head outputs lane-contiguously, then ONE c_proj matmul.
        o = jnp.concatenate(heads, axis=-1)   # (B*S, 32)
        x = x + jnp.dot(o, proj_w, preferred_element_type=jnp.float32) + proj_b

        # ---- MLP branch ----
        h2 = _layernorm(x, ln2_w, ln2_b)
        m = jnp.dot(h2, fc_w, preferred_element_type=jnp.float32) + fc_b
        m = _gelu_new(m)
        x = x + jnp.dot(m, mp_w, preferred_element_type=jnp.float32) + mp_b

    # ---- final LayerNorm + lm_head (padded to LANE -> unmasked store) ----
    fin = final_ref[...]                      # (34, 128)
    lm_w = fin[0:d, :]                        # (32, 128)
    lnf_w, lnf_b = fin[d:d + 1, 0:d], fin[d:d + 1, d:2 * d]
    lm_b = fin[d + 1:d + 2, :]                # (1, 128)
    hf = _layernorm(x, lnf_w, lnf_b)
    out_ref[...] = (jnp.dot(hf, lm_w, preferred_element_type=jnp.float32)
                    + lm_b)


# ---------------- wrapper ----------------
def _block_causal_bias(batch, seq):
    """(B*S, B*S) additive bias: 0.0 where same batch element AND causal, else -1e4."""
    idx = np.arange(batch * seq)
    row = idx[:, None]
    col = idx[None, :]
    allowed = (row >= col) & ((row // seq) == (col // seq))
    return jnp.asarray(np.where(allowed, 0.0, -1e4), jnp.float32)


def fused_forward(hidden2d, attn_bias, kernel_params):
    bs = hidden2d.shape[0]
    return pl.pallas_call(
        fused_gpt2_kernel,
        out_shape=jax.ShapeDtypeStruct((bs, LANE), jnp.float32),
        # No grid / BlockSpecs: whole arrays (~120 KB total) live in VMEM for a
        # single invocation; all layers run back-to-back with no HBM round-trips.
    )(hidden2d, attn_bias, *kernel_params)


# ---------------- deterministic parameter construction ----------------
def init_params(key):
    d = N_EMBD
    scale = 1.0 / math.sqrt(HEAD_DIM)
    n_keys = len(SEQ_VOCAB_SIZES) + N_LAYER * 4 + 1
    ki = iter(jax.random.split(key, n_keys))

    # sequence embeddings (nn.Embedding): normal(0, initializer_range)
    embeddings = [INIT_RANGE * jax.random.normal(next(ki), (vs, d), jnp.float32)
                  for vs in SEQ_VOCAB_SIZES]

    wide_w, narrow_w, vec_p = [], [], []
    for _ in range(N_LAYER):
        c_attn_w = INIT_RANGE * jax.random.normal(next(ki), (d, 3 * d), jnp.float32)
        c_attn_b = jnp.zeros((3 * d,), jnp.float32)
        c_proj_w = INIT_RANGE * jax.random.normal(next(ki), (d, d), jnp.float32)
        c_proj_b = jnp.zeros((d,), jnp.float32)
        c_fc_w = INIT_RANGE * jax.random.normal(next(ki), (d, 4 * d), jnp.float32)
        c_fc_b = jnp.zeros((4 * d,), jnp.float32)
        m_proj_w = INIT_RANGE * jax.random.normal(next(ki), (4 * d, d), jnp.float32)
        m_proj_b = jnp.zeros((d,), jnp.float32)
        ln1_w, ln1_b = jnp.ones((d,), jnp.float32), jnp.zeros((d,), jnp.float32)
        ln2_w, ln2_b = jnp.ones((d,), jnp.float32), jnp.zeros((d,), jnp.float32)

        # Fold 1/sqrt(head_dim) into the Q projection (weights + bias) once.
        c_attn_w = c_attn_w.at[:, :d].multiply(scale)
        c_attn_b = c_attn_b.at[:d].multiply(scale)

        # Wide 128-lane weights: rows 0:32 = padded c_attn, rows 32:64 = c_fc.
        qkv_w_pad = jnp.zeros((d, LANE), jnp.float32).at[:, :3 * d].set(c_attn_w)
        wide_w.append(jnp.concatenate([qkv_w_pad, c_fc_w], axis=0))        # (64,128)

        # Narrow 32-lane weights: rows 0:32 = attn c_proj, rows 32:160 = mlp proj.
        narrow_w.append(jnp.concatenate([c_proj_w, m_proj_w], axis=0))     # (160,32)

        # Per-layer vector params packed into a single (4, 128) slab.
        r0 = jnp.concatenate([ln1_w, ln1_b, ln2_w, ln2_b])
        r1 = jnp.concatenate([c_proj_b, m_proj_b,
                              jnp.zeros((2 * d,), jnp.float32)])
        r2 = jnp.zeros((LANE,), jnp.float32).at[:3 * d].set(c_attn_b)
        r3 = c_fc_b
        vec_p.append(jnp.stack([r0, r1, r2, r3]))                          # (4,128)

    # lm_head: nn.Linear(n_embd, SUM_OUT); store W^T padded to LANE columns,
    # plus ln_f params and lm_head bias, in one (34, 128) slab.
    lm_w = INIT_RANGE * jax.random.normal(next(ki), (SUM_OUT, d), jnp.float32)
    lm_b = jnp.zeros((SUM_OUT,), jnp.float32)
    lm_w_pad = jnp.zeros((d, LANE), jnp.float32).at[:, :SUM_OUT].set(lm_w.T)
    f_ln = jnp.zeros((LANE,), jnp.float32).at[:d].set(1.0)   # lnf_w=1 | lnf_b=0
    f_b = jnp.zeros((LANE,), jnp.float32).at[:SUM_OUT].set(lm_b)
    final_p = jnp.concatenate([lm_w_pad, f_ln[None], f_b[None]], axis=0)   # (34,128)

    kernel_params = (jnp.stack(wide_w),    # (N_LAYER, 64, 128)
                     jnp.stack(narrow_w),  # (N_LAYER, 160, 32)
                     jnp.stack(vec_p),     # (N_LAYER, 4, 128)
                     final_p)              # (34, 128)
    return {"embeddings": embeddings, "kernel": kernel_params}


# ---------------- full forward ----------------
def gpt2_encoder_forward(sequences, params):
    b, s = sequences[0].shape
    # sum of embedding lookups (glue, plain JAX gather)
    hidden = jnp.zeros((b, s, N_EMBD), jnp.float32)
    for si, seq in enumerate(sequences):
        hidden = hidden + params["embeddings"][si][seq]
    # TODO(synk): dropout layers (embd/attn/resid) are identity (inference mode).

    attn_bias = _block_causal_bias(b, s)
    logits_pad = fused_forward(hidden.reshape(b * s, N_EMBD), attn_bias,
                               params["kernel"])
    logits = logits_pad[:, :SUM_OUT].reshape(b, s, SUM_OUT)

    # torch.split(hidden_states, output_seq_dims, dim=-1)
    split_points = list(np.cumsum(OUTPUT_SEQ_DIMS)[:-1])
    return tuple(jnp.split(logits, split_points, axis=-1))


if __name__ == "__main__":
    key = jax.random.PRNGKey(0)
    pkey, k0, k1 = jax.random.split(key, 3)
    params = init_params(pkey)

    B, S = 2, N_POSITIONS
    seq0 = jax.random.randint(k0, (B, S), 0, SEQ_VOCAB_SIZES[0], dtype=jnp.int32)
    seq1 = jax.random.randint(k1, (B, S), 0, SEQ_VOCAB_SIZES[1], dtype=jnp.int32)

    fwd = jax.jit(lambda a, c: gpt2_encoder_forward([a, c], params))
    outs = jax.block_until_ready(fwd(seq0, seq1))

    assert outs[0].shape == (B, S, OUTPUT_SEQ_DIMS[0])
    assert outs[1].shape == (B, S, OUTPUT_SEQ_DIMS[1])
    assert all(bool(jnp.all(jnp.isfinite(o))) for o in outs)
    print("KERNEL_OK")
</pallas_src>

<mosaic_0001>
module attributes {stable_mosaic.version = 11 : i64} {
  func.func @fused_gpt2_kernel(%arg0: memref<16x32xf32, #tpu.memory_space<vmem>>, %arg1: memref<16x16xf32, #tpu.memory_space<vmem>>, %arg2: memref<2x64x128xf32, #tpu.memory_space<vmem>>, %arg3: memref<2x160x32xf32, #tpu.memory_space<vmem>>, %arg4: memref<2x4x128xf32, #tpu.memory_space<vmem>>, %arg5: memref<34x128xf32, #tpu.memory_space<vmem>>, %arg6: memref<16x128xf32, #tpu.memory_space<vmem>>) attributes {dimension_semantics = [], scalar_prefetch = 0 : i64, scratch_operands = 0 : i64, tpu.core_type = #tpu.core_type<tc>} {
    %c0 = arith.constant 0 : index
    %c0_0 = arith.constant 0 : index
    %0 = vector.load %arg0[%c0, %c0_0] : memref<16x32xf32, #tpu.memory_space<vmem>>, vector<16x32xf32>
    %c0_1 = arith.constant 0 : index
    %c0_2 = arith.constant 0 : index
    %1 = vector.load %arg1[%c0_1, %c0_2] : memref<16x16xf32, #tpu.memory_space<vmem>>, vector<16x16xf32>
    %c0_3 = arith.constant 0 : index
    %c0_4 = arith.constant 0 : index
    %c0_5 = arith.constant 0 : index
    %2 = vector.load %arg4[%c0_3, %c0_4, %c0_5] : memref<2x4x128xf32, #tpu.memory_space<vmem>>, vector<1x4x128xf32>
    %3 = vector.shape_cast %2 : vector<1x4x128xf32> to vector<4x128xf32>
    %4 = vector.extract_strided_slice %3 {offsets = [0, 0], sizes = [1, 32], strides = [1, 1]} : vector<4x128xf32> to vector<1x32xf32>
    %5 = vector.extract_strided_slice %3 {offsets = [0, 32], sizes = [1, 32], strides = [1, 1]} : vector<4x128xf32> to vector<1x32xf32>
    %6 = vector.extract_strided_slice %3 {offsets = [0, 64], sizes = [1, 32], strides = [1, 1]} : vector<4x128xf32> to vector<1x32xf32>
    %7 = vector.extract_strided_slice %3 {offsets = [0, 96], sizes = [1, 32], strides = [1, 1]} : vector<4x128xf32> to vector<1x32xf32>
    %8 = vector.extract_strided_slice %3 {offsets = [1, 0], sizes = [1, 32], strides = [1, 1]} : vector<4x128xf32> to vector<1x32xf32>
    %9 = vector.extract_strided_slice %3 {offsets = [1, 32], sizes = [1, 32], strides = [1, 1]} : vector<4x128xf32> to vector<1x32xf32>
    %10 = vector.extract_strided_slice %3 {offsets = [2, 0], sizes = [1, 128], strides = [1, 1]} : vector<4x128xf32> to vector<1x128xf32>
    %11 = vector.extract_strided_slice %3 {offsets = [3, 0], sizes = [1, 128], strides = [1, 1]} : vector<4x128xf32> to vector<1x128xf32>
    %c0_6 = arith.constant 0 : index
    %c0_7 = arith.constant 0 : index
    %c0_8 = arith.constant 0 : index
    %12 = vector.load %arg2[%c0_6, %c0_7, %c0_8] : memref<2x64x128xf32, #tpu.memory_space<vmem>>, vector<1x64x128xf32>
    %13 = vector.shape_cast %12 : vector<1x64x128xf32> to vector<64x128xf32>
    %14 = vector.extract_strided_slice %13 {offsets = [0, 0], sizes = [32, 128], strides = [1, 1]} : vector<64x128xf32> to vector<32x128xf32>
    %15 = vector.extract_strided_slice %13 {offsets = [32, 0], sizes = [32, 128], strides = [1, 1]} : vector<64x128xf32> to vector<32x128xf32>
    %c0_9 = arith.constant 0 : index
    %c0_10 = arith.constant 0 : index
    %c0_11 = arith.constant 0 : index
    %16 = vector.load %arg3[%c0_9, %c0_10, %c0_11] : memref<2x160x32xf32, #tpu.memory_space<vmem>>, vector<1x160x32xf32>
    %17 = vector.shape_cast %16 : vector<1x160x32xf32> to vector<160x32xf32>
    %18 = vector.extract_strided_slice %17 {offsets = [0, 0], sizes = [32, 32], strides = [1, 1]} : vector<160x32xf32> to vector<32x32xf32>
    %19 = vector.extract_strided_slice %17 {offsets = [32, 0], sizes = [128, 32], strides = [1, 1]} : vector<160x32xf32> to vector<128x32xf32>
    %cst = arith.constant dense<0.000000e+00> : vector<16xf32>
    %20 = vector.multi_reduction <add>, %0, %cst [1] : vector<16x32xf32> to vector<16xf32>
    %21 = vector.shape_cast %20 : vector<16xf32> to vector<16x1xf32>
    %cst_12 = arith.constant 3.200000e+01 : f32
    %22 = vector.broadcast %cst_12 : f32 to vector<16x1xf32>
    %23 = arith.divf %21, %22 : vector<16x1xf32>
    %24 = vector.broadcast %23 : vector<16x1xf32> to vector<16x32xf32>
    %25 = arith.subf %0, %24 : vector<16x32xf32>
    %26 = arith.mulf %25, %25 : vector<16x32xf32>
    %cst_13 = arith.constant dense<0.000000e+00> : vector<16xf32>
    %27 = vector.multi_reduction <add>, %26, %cst_13 [1] : vector<16x32xf32> to vector<16xf32>
    %28 = vector.shape_cast %27 : vector<16xf32> to vector<16x1xf32>
    %cst_14 = arith.constant 3.200000e+01 : f32
    %29 = vector.broadcast %cst_14 : f32 to vector<16x1xf32>
    %30 = arith.divf %28, %29 : vector<16x1xf32>
    %31 = vector.broadcast %23 : vector<16x1xf32> to vector<16x32xf32>
    %32 = arith.subf %0, %31 : vector<16x32xf32>
    %cst_15 = arith.constant 9.99999974E-6 : f32
    %33 = vector.broadcast %cst_15 : f32 to vector<16x1xf32>
    %34 = arith.addf %30, %33 : vector<16x1xf32>
    %35 = math.rsqrt %34 : vector<16x1xf32>
    %36 = vector.broadcast %35 : vector<16x1xf32> to vector<16x32xf32>
    %37 = arith.mulf %32, %36 : vector<16x32xf32>
    %38 = vector.broadcast %4 : vector<1x32xf32> to vector<16x32xf32>
    %39 = arith.mulf %37, %38 : vector<16x32xf32>
    %40 = vector.broadcast %5 : vector<1x32xf32> to vector<16x32xf32>
    %41 = arith.addf %39, %40 : vector<16x32xf32>
    %cst_16 = arith.constant dense<0.000000e+00> : vector<16x128xf32>
    %42 = tpu.matmul %41, %14, %cst_16 {dimension_numbers = #tpu.dot_dimension_numbers<[1], [0], [0], [1], [0, 0, 1, 1], [], []>} : vector<16x32xf32>, vector<32x128xf32>, vector<16x128xf32> -> vector<16x128xf32>
    %43 = vector.broadcast %10 : vector<1x128xf32> to vector<16x128xf32>
    %44 = arith.addf %42, %43 : vector<16x128xf32>
    %45 = vector.extract_strided_slice %44 {offsets = [0, 0], sizes = [16, 8], strides = [1, 1]} : vector<16x128xf32> to vector<16x8xf32>
    %46 = vector.extract_strided_slice %44 {offsets = [0, 32], sizes = [16, 8], strides = [1, 1]} : vector<16x128xf32> to vector<16x8xf32>
    %47 = vector.extract_strided_slice %44 {offsets = [0, 64], sizes = [16, 8], strides = [1, 1]} : vector<16x128xf32> to vector<16x8xf32>
    %48 = tpu.transpose %46, [1, 0] : vector<16x8xf32> -> vector<8x16xf32>
    %cst_17 = arith.constant dense<0.000000e+00> : vector<16x16xf32>
    %49 = tpu.matmul %45, %48, %cst_17 {dimension_numbers = #tpu.dot_dimension_numbers<[1], [0], [0], [1], [0, 0, 1, 1], [], []>} : vector<16x8xf32>, vector<8x16xf32>, vector<16x16xf32> -> vector<16x16xf32>
    %50 = arith.addf %49, %1 : vector<16x16xf32>
    %51 = math.exp %50 : vector<16x16xf32>
    %cst_18 = arith.constant dense<0.000000e+00> : vector<16xf32>
    %52 = vector.multi_reduction <add>, %51, %cst_18 [1] : vector<16x16xf32> to vector<16xf32>
    %53 = vector.shape_cast %52 : vector<16xf32> to vector<16x1xf32>
    %54 = tpu.reciprocal %53 {approx = true} : vector<16x1xf32> -> vector<16x1xf32>
    %55 = vector.broadcast %54 : vector<16x1xf32> to vector<16x16xf32>
    %56 = arith.mulf %51, %55 : vector<16x16xf32>
    %cst_19 = arith.constant dense<0.000000e+00> : vector<16x8xf32>
    %57 = tpu.matmul %56, %47, %cst_19 {dimension_numbers = #tpu.dot_dimension_numbers<[1], [0], [0], [1], [0, 0, 1, 1], [], []>} : vector<16x16xf32>, vector<16x8xf32>, vector<16x8xf32> -> vector<16x8xf32>
    %58 = vector.extract_strided_slice %44 {offsets = [0, 8], sizes = [16, 8], strides = [1, 1]} : vector<16x128xf32> to vector<16x8xf32>
    %59 = vector.extract_strided_slice %44 {offsets = [0, 40], sizes = [16, 8], strides = [1, 1]} : vector<16x128xf32> to vector<16x8xf32>
    %60 = vector.extract_strided_slice %44 {offsets = [0, 72], sizes = [16, 8], strides = [1, 1]} : vector<16x128xf32> to vector<16x8xf32>
    %61 = tpu.transpose %59, [1, 0] : vector<16x8xf32> -> vector<8x16xf32>
    %cst_20 = arith.constant dense<0.000000e+00> : vector<16x16xf32>
    %62 = tpu.matmul %58, %61, %cst_20 {dimension_numbers = #tpu.dot_dimension_numbers<[1], [0], [0], [1], [0, 0, 1, 1], [], []>} : vector<16x8xf32>, vector<8x16xf32>, vector<16x16xf32> -> vector<16x16xf32>
    %63 = arith.addf %62, %1 : vector<16x16xf32>
    %64 = math.exp %63 : vector<16x16xf32>
    %cst_21 = arith.constant dense<0.000000e+00> : vector<16xf32>
    %65 = vector.multi_reduction <add>, %64, %cst_21 [1] : vector<16x16xf32> to vector<16xf32>
    %66 = vector.shape_cast %65 : vector<16xf32> to vector<16x1xf32>
    %67 = tpu.reciprocal %66 {approx = true} : vector<16x1xf32> -> vector<16x1xf32>
    %68 = vector.broadcast %67 : vector<16x1xf32> to vector<16x16xf32>
    %69 = arith.mulf %64, %68 : vector<16x16xf32>
    %cst_22 = arith.constant dense<0.000000e+00> : vector<16x8xf32>
    %70 = tpu.matmul %69, %60, %cst_22 {dimension_numbers = #tpu.dot_dimension_numbers<[1], [0], [0], [1], [0, 0, 1, 1], [], []>} : vector<16x16xf32>, vector<16x8xf32>, vector<16x8xf32> -> vector<16x8xf32>
    %71 = vector.extract_strided_slice %44 {offsets = [0, 16], sizes = [16, 8], strides = [1, 1]} : vector<16x128xf32> to vector<16x8xf32>
    %72 = vector.extract_strided_slice %44 {offsets = [0, 48], sizes = [16, 8], strides = [1, 1]} : vector<16x128xf32> to vector<16x8xf32>
    %73 = vector.extract_strided_slice %44 {offsets = [0, 80], sizes = [16, 8], strides = [1, 1]} : vector<16x128xf32> to vector<16x8xf32>
    %74 = tpu.transpose %72, [1, 0] : vector<16x8xf32> -> vector<8x16xf32>
    %cst_23 = arith.constant dense<0.000000e+00> : vector<16x16xf32>
    %75 = tpu.matmul %71, %74, %cst_23 {dimension_numbers = #tpu.dot_dimension_numbers<[1], [0], [0], [1], [0, 0, 1, 1], [], []>} : vector<16x8xf32>, vector<8x16xf32>, vector<16x16xf32> -> vector<16x16xf32>
    %76 = arith.addf %75, %1 : vector<16x16xf32>
    %77 = math.exp %76 : vector<16x16xf32>
    %cst_24 = arith.constant dense<0.000000e+00> : vector<16xf32>
    %78 = vector.multi_reduction <add>, %77, %cst_24 [1] : vector<16x16xf32> to vector<16xf32>
    %79 = vector.shape_cast %78 : vector<16xf32> to vector<16x1xf32>
    %80 = tpu.reciprocal %79 {approx = true} : vector<16x1xf32> -> vector<16x1xf32>
    %81 = vector.broadcast %80 : vector<16x1xf32> to vector<16x16xf32>
    %82 = arith.mulf %77, %81 : vector<16x16xf32>
    %cst_25 = arith.constant dense<0.000000e+00> : vector<16x8xf32>
    %83 = tpu.matmul %82, %73, %cst_25 {dimension_numbers = #tpu.dot_dimension_numbers<[1], [0], [0], [1], [0, 0, 1, 1], [], []>} : vector<16x16xf32>, vector<16x8xf32>, vector<16x8xf32> -> vector<16x8xf32>
    %84 = vector.extract_strided_slice %44 {offsets = [0, 24], sizes = [16, 8], strides = [1, 1]} : vector<16x128xf32> to vector<16x8xf32>
    %85 = vector.extract_strided_slice %44 {offsets = [0, 56], sizes = [16, 8], strides = [1, 1]} : vector<16x128xf32> to vector<16x8xf32>
    %86 = vector.extract_strided_slice %44 {offsets = [0, 88], sizes = [16, 8], strides = [1, 1]} : vector<16x128xf32> to vector<16x8xf32>
    %87 = tpu.transpose %85, [1, 0] : vector<16x8xf32> -> vector<8x16xf32>
    %cst_26 = arith.constant dense<0.000000e+00> : vector<16x16xf32>
    %88 = tpu.matmul %84, %87, %cst_26 {dimension_numbers = #tpu.dot_dimension_numbers<[1], [0], [0], [1], [0, 0, 1, 1], [], []>} : vector<16x8xf32>, vector<8x16xf32>, vector<16x16xf32> -> vector<16x16xf32>
    %89 = arith.addf %88, %1 : vector<16x16xf32>
    %90 = math.exp %89 : vector<16x16xf32>
    %cst_27 = arith.constant dense<0.000000e+00> : vector<16xf32>
    %91 = vector.multi_reduction <add>, %90, %cst_27 [1] : vector<16x16xf32> to vector<16xf32>
    %92 = vector.shape_cast %91 : vector<16xf32> to vector<16x1xf32>
    %93 = tpu.reciprocal %92 {approx = true} : vector<16x1xf32> -> vector<16x1xf32>
    %94 = vector.broadcast %93 : vector<16x1xf32> to vector<16x16xf32>
    %95 = arith.mulf %90, %94 : vector<16x16xf32>
    %cst_28 = arith.constant dense<0.000000e+00> : vector<16x8xf32>
    %96 = tpu.matmul %95, %86, %cst_28 {dimension_numbers = #tpu.dot_dimension_numbers<[1], [0], [0], [1], [0, 0, 1, 1], [], []>} : vector<16x16xf32>, vector<16x8xf32>, vector<16x8xf32> -> vector<16x8xf32>
    %97 = tpu.concatenate %57, %70, %83, %96 in 1 : vector<16x8xf32>, vector<16x8xf32>, vector<16x8xf32>, vector<16x8xf32> -> vector<16x32xf32>
    %cst_29 = arith.constant dense<0.000000e+00> : vector<16x32xf32>
    %98 = tpu.matmul %97, %18, %cst_29 {dimension_numbers = #tpu.dot_dimension_numbers<[1], [0], [0], [1], [0, 0, 1, 1], [], []>} : vector<16x32xf32>, vector<32x32xf32>, vector<16x32xf32> -> vector<16x32xf32>
    %99 = arith.addf %0, %98 : vector<16x32xf32>
    %100 = vector.broadcast %8 : vector<1x32xf32> to vector<16x32xf32>
    %101 = arith.addf %99, %100 : vector<16x32xf32>
    %cst_30 = arith.constant dense<0.000000e+00> : vector<16xf32>
    %102 = vector.multi_reduction <add>, %101, %cst_30 [1] : vector<16x32xf32> to vector<16xf32>
    %103 = vector.shape_cast %102 : vector<16xf32> to vector<16x1xf32>
    %cst_31 = arith.constant 3.200000e+01 : f32
    %104 = vector.broadcast %cst_31 : f32 to vector<16x1xf32>
    %105 = arith.divf %103, %104 : vector<16x1xf32>
    %106 = vector.broadcast %105 : vector<16x1xf32> to vector<16x32xf32>
    %107 = arith.subf %101, %106 : vector<16x32xf32>
    %108 = arith.mulf %107, %107 : vector<16x32xf32>
    %cst_32 = arith.constant dense<0.000000e+00> : vector<16xf32>
    %109 = vector.multi_reduction <add>, %108, %cst_32 [1] : vector<16x32xf32> to vector<16xf32>
    %110 = vector.shape_cast %109 : vector<16xf32> to vector<16x1xf32>
    %cst_33 = arith.constant 3.200000e+01 : f32
    %111 = vector.broadcast %cst_33 : f32 to vector<16x1xf32>
    %112 = arith.divf %110, %111 : vector<16x1xf32>
    %113 = vector.broadcast %105 : vector<16x1xf32> to vector<16x32xf32>
    %114 = arith.subf %101, %113 : vector<16x32xf32>
    %cst_34 = arith.constant 9.99999974E-6 : f32
    %115 = vector.broadcast %cst_34 : f32 to vector<16x1xf32>
    %116 = arith.addf %112, %115 : vector<16x1xf32>
    %117 = math.rsqrt %116 : vector<16x1xf32>
    %118 = vector.broadcast %117 : vector<16x1xf32> to vector<16x32xf32>
    %119 = arith.mulf %114, %118 : vector<16x32xf32>
    %120 = vector.broadcast %6 : vector<1x32xf32> to vector<16x32xf32>
    %121 = arith.mulf %119, %120 : vector<16x32xf32>
    %122 = vector.broadcast %7 : vector<1x32xf32> to vector<16x32xf32>
    %123 = arith.addf %121, %122 : vector<16x32xf32>
    %cst_35 = arith.constant dense<0.000000e+00> : vector<16x128xf32>
    %124 = tpu.matmul %123, %15, %cst_35 {dimension_numbers = #tpu.dot_dimension_numbers<[1], [0], [0], [1], [0, 0, 1, 1], [], []>} : vector<16x32xf32>, vector<32x128xf32>, vector<16x128xf32> -> vector<16x128xf32>
    %125 = vector.broadcast %11 : vector<1x128xf32> to vector<16x128xf32>
    %126 = arith.addf %124, %125 : vector<16x128xf32>
    %cst_36 = arith.constant 5.000000e-01 : f32
    %127 = vector.broadcast %cst_36 : f32 to vector<16x128xf32>
    %128 = arith.mulf %127, %126 : vector<16x128xf32>
    %129 = arith.mulf %126, %126 : vector<16x128xf32>
    %130 = arith.mulf %126, %129 : vector<16x128xf32>
    %cst_37 = arith.constant 4.471500e-02 : f32
    %131 = vector.broadcast %cst_37 : f32 to vector<16x128xf32>
    %132 = arith.mulf %131, %130 : vector<16x128xf32>
    %133 = arith.addf %126, %132 : vector<16x128xf32>
    %cst_38 = arith.constant 0.797884583 : f32
    %134 = vector.broadcast %cst_38 : f32 to vector<16x128xf32>
    %135 = arith.mulf %134, %133 : vector<16x128xf32>
    %136 = math.tanh %135 : vector<16x128xf32>
    %cst_39 = arith.constant 1.000000e+00 : f32
    %137 = vector.broadcast %cst_39 : f32 to vector<16x128xf32>
    %138 = arith.addf %137, %136 : vector<16x128xf32>
    %139 = arith.mulf %128, %138 : vector<16x128xf32>
    %cst_40 = arith.constant dense<0.000000e+00> : vector<16x32xf32>
    %140 = tpu.matmul %139, %19, %cst_40 {dimension_numbers = #tpu.dot_dimension_numbers<[1], [0], [0], [1], [0, 0, 1, 1], [], []>} : vector<16x128xf32>, vector<128x32xf32>, vector<16x32xf32> -> vector<16x32xf32>
    %141 = arith.addf %101, %140 : vector<16x32xf32>
    %142 = vector.broadcast %9 : vector<1x32xf32> to vector<16x32xf32>
    %143 = arith.addf %141, %142 : vector<16x32xf32>
    %c1 = arith.constant 1 : index
    %c0_41 = arith.constant 0 : index
    %c0_42 = arith.constant 0 : index
    %144 = vector.load %arg4[%c1, %c0_41, %c0_42] : memref<2x4x128xf32, #tpu.memory_space<vmem>>, vector<1x4x128xf32>
    %145 = vector.shape_cast %144 : vector<1x4x128xf32> to vector<4x128xf32>
    %146 = vector.extract_strided_slice %145 {offsets = [0, 0], sizes = [1, 32], strides = [1, 1]} : vector<4x128xf32> to vector<1x32xf32>
    %147 = vector.extract_strided_slice %145 {offsets = [0, 32], sizes = [1, 32], strides = [1, 1]} : vector<4x128xf32> to vector<1x32xf32>
    %148 = vector.extract_strided_slice %145 {offsets = [0, 64], sizes = [1, 32], strides = [1, 1]} : vector<4x128xf32> to vector<1x32xf32>
    %149 = vector.extract_strided_slice %145 {offsets = [0, 96], sizes = [1, 32], strides = [1, 1]} : vector<4x128xf32> to vector<1x32xf32>
    %150 = vector.extract_strided_slice %145 {offsets = [1, 0], sizes = [1, 32], strides = [1, 1]} : vector<4x128xf32> to vector<1x32xf32>
    %151 = vector.extract_strided_slice %145 {offsets = [1, 32], sizes = [1, 32], strides = [1, 1]} : vector<4x128xf32> to vector<1x32xf32>
    %152 = vector.extract_strided_slice %145 {offsets = [2, 0], sizes = [1, 128], strides = [1, 1]} : vector<4x128xf32> to vector<1x128xf32>
    %153 = vector.extract_strided_slice %145 {offsets = [3, 0], sizes = [1, 128], strides = [1, 1]} : vector<4x128xf32> to vector<1x128xf32>
    %c1_43 = arith.constant 1 : index
    %c0_44 = arith.constant 0 : index
    %c0_45 = arith.constant 0 : index
    %154 = vector.load %arg2[%c1_43, %c0_44, %c0_45] : memref<2x64x128xf32, #tpu.memory_space<vmem>>, vector<1x64x128xf32>
    %155 = vector.shape_cast %154 : vector<1x64x128xf32> to vector<64x128xf32>
    %156 = vector.extract_strided_slice %155 {offsets = [0, 0], sizes = [32, 128], strides = [1, 1]} : vector<64x128xf32> to vector<32x128xf32>
    %157 = vector.extract_strided_slice %155 {offsets = [32, 0], sizes = [32, 128], strides = [1, 1]} : vector<64x128xf32> to vector<32x128xf32>
    %c1_46 = arith.constant 1 : index
    %c0_47 = arith.constant 0 : index
    %c0_48 = arith.constant 0 : index
    %158 = vector.load %arg3[%c1_46, %c0_47, %c0_48] : memref<2x160x32xf32, #tpu.memory_space<vmem>>, vector<1x160x32xf32>
    %159 = vector.shape_cast %158 : vector<1x160x32xf32> to vector<160x32xf32>
    %160 = vector.extract_strided_slice %159 {offsets = [0, 0], sizes = [32, 32], strides = [1, 1]} : vector<160x32xf32> to vector<32x32xf32>
    %161 = vector.extract_strided_slice %159 {offsets = [32, 0], sizes = [128, 32], strides = [1, 1]} : vector<160x32xf32> to vector<128x32xf32>
    %cst_49 = arith.constant dense<0.000000e+00> : vector<16xf32>
    %162 = vector.multi_reduction <add>, %143, %cst_49 [1] : vector<16x32xf32> to vector<16xf32>
    %163 = vector.shape_cast %162 : vector<16xf32> to vector<16x1xf32>
    %cst_50 = arith.constant 3.200000e+01 : f32
    %164 = vector.broadcast %cst_50 : f32 to vector<16x1xf32>
    %165 = arith.divf %163, %164 : vector<16x1xf32>
    %166 = vector.broadcast %165 : vector<16x1xf32> to vector<16x32xf32>
    %167 = arith.subf %143, %166 : vector<16x32xf32>
    %168 = arith.mulf %167, %167 : vector<16x32xf32>
    %cst_51 = arith.constant dense<0.000000e+00> : vector<16xf32>
    %169 = vector.multi_reduction <add>, %168, %cst_51 [1] : vector<16x32xf32> to vector<16xf32>
    %170 = vector.shape_cast %169 : vector<16xf32> to vector<16x1xf32>
    %cst_52 = arith.constant 3.200000e+01 : f32
    %171 = vector.broadcast %cst_52 : f32 to vector<16x1xf32>
    %172 = arith.divf %170, %171 : vector<16x1xf32>
    %173 = vector.broadcast %165 : vector<16x1xf32> to vector<16x32xf32>
    %174 = arith.subf %143, %173 : vector<16x32xf32>
    %cst_53 = arith.constant 9.99999974E-6 : f32
    %175 = vector.broadcast %cst_53 : f32 to vector<16x1xf32>
    %176 = arith.addf %172, %175 : vector<16x1xf32>
    %177 = math.rsqrt %176 : vector<16x1xf32>
    %178 = vector.broadcast %177 : vector<16x1xf32> to vector<16x32xf32>
    %179 = arith.mulf %174, %178 : vector<16x32xf32>
    %180 = vector.broadcast %146 : vector<1x32xf32> to vector<16x32xf32>
    %181 = arith.mulf %179, %180 : vector<16x32xf32>
    %182 = vector.broadcast %147 : vector<1x32xf32> to vector<16x32xf32>
    %183 = arith.addf %181, %182 : vector<16x32xf32>
    %cst_54 = arith.constant dense<0.000000e+00> : vector<16x128xf32>
    %184 = tpu.matmul %183, %156, %cst_54 {dimension_numbers = #tpu.dot_dimension_numbers<[1], [0], [0], [1], [0, 0, 1, 1], [], []>} : vector<16x32xf32>, vector<32x128xf32>, vector<16x128xf32> -> vector<16x128xf32>
    %185 = vector.broadcast %152 : vector<1x128xf32> to vector<16x128xf32>
    %186 = arith.addf %184, %185 : vector<16x128xf32>
    %187 = vector.extract_strided_slice %186 {offsets = [0, 0], sizes = [16, 8], strides = [1, 1]} : vector<16x128xf32> to vector<16x8xf32>
    %188 = vector.extract_strided_slice %186 {offsets = [0, 32], sizes = [16, 8], strides = [1, 1]} : vector<16x128xf32> to vector<16x8xf32>
    %189 = vector.extract_strided_slice %186 {offsets = [0, 64], sizes = [16, 8], strides = [1, 1]} : vector<16x128xf32> to vector<16x8xf32>
    %190 = tpu.transpose %188, [1, 0] : vector<16x8xf32> -> vector<8x16xf32>
    %cst_55 = arith.constant dense<0.000000e+00> : vector<16x16xf32>
    %191 = tpu.matmul %187, %190, %cst_55 {dimension_numbers = #tpu.dot_dimension_numbers<[1], [0], [0], [1], [0, 0, 1, 1], [], []>} : vector<16x8xf32>, vector<8x16xf32>, vector<16x16xf32> -> vector<16x16xf32>
    %192 = arith.addf %191, %1 : vector<16x16xf32>
    %193 = math.exp %192 : vector<16x16xf32>
    %cst_56 = arith.constant dense<0.000000e+00> : vector<16xf32>
    %194 = vector.multi_reduction <add>, %193, %cst_56 [1] : vector<16x16xf32> to vector<16xf32>
    %195 = vector.shape_cast %194 : vector<16xf32> to vector<16x1xf32>
    %196 = tpu.reciprocal %195 {approx = true} : vector<16x1xf32> -> vector<16x1xf32>
    %197 = vector.broadcast %196 : vector<16x1xf32> to vector<16x16xf32>
    %198 = arith.mulf %193, %197 : vector<16x16xf32>
    %cst_57 = arith.constant dense<0.000000e+00> : vector<16x8xf32>
    %199 = tpu.matmul %198, %189, %cst_57 {dimension_numbers = #tpu.dot_dimension_numbers<[1], [0], [0], [1], [0, 0, 1, 1], [], []>} : vector<16x16xf32>, vector<16x8xf32>, vector<16x8xf32> -> vector<16x8xf32>
    %200 = vector.extract_strided_slice %186 {offsets = [0, 8], sizes = [16, 8], strides = [1, 1]} : vector<16x128xf32> to vector<16x8xf32>
    %201 = vector.extract_strided_slice %186 {offsets = [0, 40], sizes = [16, 8], strides = [1, 1]} : vector<16x128xf32> to vector<16x8xf32>
    %202 = vector.extract_strided_slice %186 {offsets = [0, 72], sizes = [16, 8], strides = [1, 1]} : vector<16x128xf32> to vector<16x8xf32>
    %203 = tpu.transpose %201, [1, 0] : vector<16x8xf32> -> vector<8x16xf32>
    %cst_58 = arith.constant dense<0.000000e+00> : vector<16x16xf32>
    %204 = tpu.matmul %200, %203, %cst_58 {dimension_numbers = #tpu.dot_dimension_numbers<[1], [0], [0], [1], [0, 0, 1, 1], [], []>} : vector<16x8xf32>, vector<8x16xf32>, vector<16x16xf32> -> vector<16x16xf32>
    %205 = arith.addf %204, %1 : vector<16x16xf32>
    %206 = math.exp %205 : vector<16x16xf32>
    %cst_59 = arith.constant dense<0.000000e+00> : vector<16xf32>
    %207 = vector.multi_reduction <add>, %206, %cst_59 [1] : vector<16x16xf32> to vector<16xf32>
    %208 = vector.shape_cast %207 : vector<16xf32> to vector<16x1xf32>
    %209 = tpu.reciprocal %208 {approx = true} : vector<16x1xf32> -> vector<16x1xf32>
    %210 = vector.broadcast %209 : vector<16x1xf32> to vector<16x16xf32>
    %211 = arith.mulf %206, %210 : vector<16x16xf32>
    %cst_60 = arith.constant dense<0.000000e+00> : vector<16x8xf32>
    %212 = tpu.matmul %211, %202, %cst_60 {dimension_numbers = #tpu.dot_dimension_numbers<[1], [0], [0], [1], [0, 0, 1, 1], [], []>} : vector<16x16xf32>, vector<16x8xf32>, vector<16x8xf32> -> vector<16x8xf32>
    %213 = vector.extract_strided_slice %186 {offsets = [0, 16], sizes = [16, 8], strides = [1, 1]} : vector<16x128xf32> to vector<16x8xf32>
    %214 = vector.extract_strided_slice %186 {offsets = [0, 48], sizes = [16, 8], strides = [1, 1]} : vector<16x128xf32> to vector<16x8xf32>
    %215 = vector.extract_strided_slice %186 {offsets = [0, 80], sizes = [16, 8], strides = [1, 1]} : vector<16x128xf32> to vector<16x8xf32>
    %216 = tpu.transpose %214, [1, 0] : vector<16x8xf32> -> vector<8x16xf32>
    %cst_61 = arith.constant dense<0.000000e+00> : vector<16x16xf32>
    %217 = tpu.matmul %213, %216, %cst_61 {dimension_numbers = #tpu.dot_dimension_numbers<[1], [0], [0], [1], [0, 0, 1, 1], [], []>} : vector<16x8xf32>, vector<8x16xf32>, vector<16x16xf32> -> vector<16x16xf32>
    %218 = arith.addf %217, %1 : vector<16x16xf32>
    %219 = math.exp %218 : vector<16x16xf32>
    %cst_62 = arith.constant dense<0.000000e+00> : vector<16xf32>
    %220 = vector.multi_reduction <add>, %219, %cst_62 [1] : vector<16x16xf32> to vector<16xf32>
    %221 = vector.shape_cast %220 : vector<16xf32> to vector<16x1xf32>
    %222 = tpu.reciprocal %221 {approx = true} : vector<16x1xf32> -> vector<16x1xf32>
    %223 = vector.broadcast %222 : vector<16x1xf32> to vector<16x16xf32>
    %224 = arith.mulf %219, %223 : vector<16x16xf32>
    %cst_63 = arith.constant dense<0.000000e+00> : vector<16x8xf32>
    %225 = tpu.matmul %224, %215, %cst_63 {dimension_numbers = #tpu.dot_dimension_numbers<[1], [0], [0], [1], [0, 0, 1, 1], [], []>} : vector<16x16xf32>, vector<16x8xf32>, vector<16x8xf32> -> vector<16x8xf32>
    %226 = vector.extract_strided_slice %186 {offsets = [0, 24], sizes = [16, 8], strides = [1, 1]} : vector<16x128xf32> to vector<16x8xf32>
    %227 = vector.extract_strided_slice %186 {offsets = [0, 56], sizes = [16, 8], strides = [1, 1]} : vector<16x128xf32> to vector<16x8xf32>
    %228 = vector.extract_strided_slice %186 {offsets = [0, 88], sizes = [16, 8], strides = [1, 1]} : vector<16x128xf32> to vector<16x8xf32>
    %229 = tpu.transpose %227, [1, 0] : vector<16x8xf32> -> vector<8x16xf32>
    %cst_64 = arith.constant dense<0.000000e+00> : vector<16x16xf32>
    %230 = tpu.matmul %226, %229, %cst_64 {dimension_numbers = #tpu.dot_dimension_numbers<[1], [0], [0], [1], [0, 0, 1, 1], [], []>} : vector<16x8xf32>, vector<8x16xf32>, vector<16x16xf32> -> vector<16x16xf32>
    %231 = arith.addf %230, %1 : vector<16x16xf32>
    %232 = math.exp %231 : vector<16x16xf32>
    %cst_65 = arith.constant dense<0.000000e+00> : vector<16xf32>
    %233 = vector.multi_reduction <add>, %232, %cst_65 [1] : vector<16x16xf32> to vector<16xf32>
    %234 = vector.shape_cast %233 : vector<16xf32> to vector<16x1xf32>
    %235 = tpu.reciprocal %234 {approx = true} : vector<16x1xf32> -> vector<16x1xf32>
    %236 = vector.broadcast %235 : vector<16x1xf32> to vector<16x16xf32>
    %237 = arith.mulf %232, %236 : vector<16x16xf32>
    %cst_66 = arith.constant dense<0.000000e+00> : vector<16x8xf32>
    %238 = tpu.matmul %237, %228, %cst_66 {dimension_numbers = #tpu.dot_dimension_numbers<[1], [0], [0], [1], [0, 0, 1, 1], [], []>} : vector<16x16xf32>, vector<16x8xf32>, vector<16x8xf32> -> vector<16x8xf32>
    %239 = tpu.concatenate %199, %212, %225, %238 in 1 : vector<16x8xf32>, vector<16x8xf32>, vector<16x8xf32>, vector<16x8xf32> -> vector<16x32xf32>
    %cst_67 = arith.constant dense<0.000000e+00> : vector<16x32xf32>
    %240 = tpu.matmul %239, %160, %cst_67 {dimension_numbers = #tpu.dot_dimension_numbers<[1], [0], [0], [1], [0, 0, 1, 1], [], []>} : vector<16x32xf32>, vector<32x32xf32>, vector<16x32xf32> -> vector<16x32xf32>
    %241 = arith.addf %143, %240 : vector<16x32xf32>
    %242 = vector.broadcast %150 : vector<1x32xf32> to vector<16x32xf32>
    %243 = arith.addf %241, %242 : vector<16x32xf32>
    %cst_68 = arith.constant dense<0.000000e+00> : vector<16xf32>
    %244 = vector.multi_reduction <add>, %243, %cst_68 [1] : vector<16x32xf32> to vector<16xf32>
    %245 = vector.shape_cast %244 : vector<16xf32> to vector<16x1xf32>
    %cst_69 = arith.constant 3.200000e+01 : f32
    %246 = vector.broadcast %cst_69 : f32 to vector<16x1xf32>
    %247 = arith.divf %245, %246 : vector<16x1xf32>
    %248 = vector.broadcast %247 : vector<16x1xf32> to vector<16x32xf32>
    %249 = arith.subf %243, %248 : vector<16x32xf32>
    %250 = arith.mulf %249, %249 : vector<16x32xf32>
    %cst_70 = arith.constant dense<0.000000e+00> : vector<16xf32>
    %251 = vector.multi_reduction <add>, %250, %cst_70 [1] : vector<16x32xf32> to vector<16xf32>
    %252 = vector.shape_cast %251 : vector<16xf32> to vector<16x1xf32>
    %cst_71 = arith.constant 3.200000e+01 : f32
    %253 = vector.broadcast %cst_71 : f32 to vector<16x1xf32>
    %254 = arith.divf %252, %253 : vector<16x1xf32>
    %255 = vector.broadcast %247 : vector<16x1xf32> to vector<16x32xf32>
    %256 = arith.subf %243, %255 : vector<16x32xf32>
    %cst_72 = arith.constant 9.99999974E-6 : f32
    %257 = vector.broadcast %cst_72 : f32 to vector<16x1xf32>
    %258 = arith.addf %254, %257 : vector<16x1xf32>
    %259 = math.rsqrt %258 : vector<16x1xf32>
    %260 = vector.broadcast %259 : vector<16x1xf32> to vector<16x32xf32>
    %261 = arith.mulf %256, %260 : vector<16x32xf32>
    %262 = vector.broadcast %148 : vector<1x32xf32> to vector<16x32xf32>
    %263 = arith.mulf %261, %262 : vector<16x32xf32>
    %264 = vector.broadcast %149 : vector<1x32xf32> to vector<16x32xf32>
    %265 = arith.addf %263, %264 : vector<16x32xf32>
    %cst_73 = arith.constant dense<0.000000e+00> : vector<16x128xf32>
    %266 = tpu.matmul %265, %157, %cst_73 {dimension_numbers = #tpu.dot_dimension_numbers<[1], [0], [0], [1], [0, 0, 1, 1], [], []>} : vector<16x32xf32>, vector<32x128xf32>, vector<16x128xf32> -> vector<16x128xf32>
    %267 = vector.broadcast %153 : vector<1x128xf32> to vector<16x128xf32>
    %268 = arith.addf %266, %267 : vector<16x128xf32>
    %cst_74 = arith.constant 5.000000e-01 : f32
    %269 = vector.broadcast %cst_74 : f32 to vector<16x128xf32>
    %270 = arith.mulf %269, %268 : vector<16x128xf32>
    %271 = arith.mulf %268, %268 : vector<16x128xf32>
    %272 = arith.mulf %268, %271 : vector<16x128xf32>
    %cst_75 = arith.constant 4.471500e-02 : f32
    %273 = vector.broadcast %cst_75 : f32 to vector<16x128xf32>
    %274 = arith.mulf %273, %272 : vector<16x128xf32>
    %275 = arith.addf %268, %274 : vector<16x128xf32>
    %cst_76 = arith.constant 0.797884583 : f32
    %276 = vector.broadcast %cst_76 : f32 to vector<16x128xf32>
    %277 = arith.mulf %276, %275 : vector<16x128xf32>
    %278 = math.tanh %277 : vector<16x128xf32>
    %cst_77 = arith.constant 1.000000e+00 : f32
    %279 = vector.broadcast %cst_77 : f32 to vector<16x128xf32>
    %280 = arith.addf %279, %278 : vector<16x128xf32>
    %281 = arith.mulf %270, %280 : vector<16x128xf32>
    %cst_78 = arith.constant dense<0.000000e+00> : vector<16x32xf32>
    %282 = tpu.matmul %281, %161, %cst_78 {dimension_numbers = #tpu.dot_dimension_numbers<[1], [0], [0], [1], [0, 0, 1, 1], [], []>} : vector<16x128xf32>, vector<128x32xf32>, vector<16x32xf32> -> vector<16x32xf32>
    %283 = arith.addf %243, %282 : vector<16x32xf32>
    %284 = vector.broadcast %151 : vector<1x32xf32> to vector<16x32xf32>
    %285 = arith.addf %283, %284 : vector<16x32xf32>
    %c0_79 = arith.constant 0 : index
    %c0_80 = arith.constant 0 : index
    %286 = vector.load %arg5[%c0_79, %c0_80] : memref<34x128xf32, #tpu.memory_space<vmem>>, vector<34x128xf32>
    %287 = vector.extract_strided_slice %286 {offsets = [0, 0], sizes = [32, 128], strides = [1, 1]} : vector<34x128xf32> to vector<32x128xf32>
    %288 = vector.extract_strided_slice %286 {offsets = [32, 0], sizes = [1, 32], strides = [1, 1]} : vector<34x128xf32> to vector<1x32xf32>
    %289 = vector.extract_strided_slice %286 {offsets = [32, 32], sizes = [1, 32], strides = [1, 1]} : vector<34x128xf32> to vector<1x32xf32>
    %290 = vector.extract_strided_slice %286 {offsets = [33, 0], sizes = [1, 128], strides = [1, 1]} : vector<34x128xf32> to vector<1x128xf32>
    %cst_81 = arith.constant dense<0.000000e+00> : vector<16xf32>
    %291 = vector.multi_reduction <add>, %285, %cst_81 [1] : vector<16x32xf32> to vector<16xf32>
    %292 = vector.shape_cast %291 : vector<16xf32> to vector<16x1xf32>
    %cst_82 = arith.constant 3.200000e+01 : f32
    %293 = vector.broadcast %cst_82 : f32 to vector<16x1xf32>
    %294 = arith.divf %292, %293 : vector<16x1xf32>
    %295 = vector.broadcast %294 : vector<16x1xf32> to vector<16x32xf32>
    %296 = arith.subf %285, %295 : vector<16x32xf32>
    %297 = arith.mulf %296, %296 : vector<16x32xf32>
    %cst_83 = arith.constant dense<0.000000e+00> : vector<16xf32>
    %298 = vector.multi_reduction <add>, %297, %cst_83 [1] : vector<16x32xf32> to vector<16xf32>
    %299 = vector.shape_cast %298 : vector<16xf32> to vector<16x1xf32>
    %cst_84 = arith.constant 3.200000e+01 : f32
    %300 = vector.broadcast %cst_84 : f32 to vector<16x1xf32>
    %301 = arith.divf %299, %300 : vector<16x1xf32>
    %302 = vector.broadcast %294 : vector<16x1xf32> to vector<16x32xf32>
    %303 = arith.subf %285, %302 : vector<16x32xf32>
    %cst_85 = arith.constant 9.99999974E-6 : f32
    %304 = vector.broadcast %cst_85 : f32 to vector<16x1xf32>
    %305 = arith.addf %301, %304 : vector<16x1xf32>
    %306 = math.rsqrt %305 : vector<16x1xf32>
    %307 = vector.broadcast %306 : vector<16x1xf32> to vector<16x32xf32>
    %308 = arith.mulf %303, %307 : vector<16x32xf32>
    %309 = vector.broadcast %288 : vector<1x32xf32> to vector<16x32xf32>
    %310 = arith.mulf %308, %309 : vector<16x32xf32>
    %311 = vector.broadcast %289 : vector<1x32xf32> to vector<16x32xf32>
    %312 = arith.addf %310, %311 : vector<16x32xf32>
    %cst_86 = arith.constant dense<0.000000e+00> : vector<16x128xf32>
    %313 = tpu.matmul %312, %287, %cst_86 {dimension_numbers = #tpu.dot_dimension_numbers<[1], [0], [0], [1], [0, 0, 1, 1], [], []>} : vector<16x32xf32>, vector<32x128xf32>, vector<16x128xf32> -> vector<16x128xf32>
    %314 = vector.broadcast %290 : vector<1x128xf32> to vector<16x128xf32>
    %315 = arith.addf %313, %314 : vector<16x128xf32>
    %c0_87 = arith.constant 0 : index
    %c0_88 = arith.constant 0 : index
    %316 = vector.load %arg6[%c0_87, %c0_88] : memref<16x128xf32, #tpu.memory_space<vmem>>, vector<16x128xf32>
    tpu.vector_store %arg6[%c0_87, %c0_88], %315 {strides = array<i32>} : memref<16x128xf32, #tpu.memory_space<vmem>>, vector<16x128xf32>,
    return
  }
}

</mosaic_0001>

<bundles_post_ra>
// kernel: split.1
= control target key start
LH: loop header
LB: loop body
LE: loop exit
PB: predicated region body
PF: predicated region fallthrough
CT: control target
= control target key end

     0   :  { %v4_v0 = vlaneseq  ;;  %s89_s0 = inlined_call_operand.vmem [shape: f32[2,8,22], index: 0, kind: input, shape index: {}]   ;;  %s90_s1 = inlined_call_operand.hbm [shape: f32[2,8,12], index: 1, kind: output, shape index: {}]  }
   0x1   :  { %2 = vsyncpa [#allocation6], 0  ;;  %v3_v1 = vld [vmem:[%s89_s0] sm:$0xff]  ;;  %s66_s8 = smov 118   ;;  %v35_v4 = vld [vmem:[%s89_s0 + $0x8] sm:$0xff]  ;;  %s67_s0 = smov [#allocation5]  }
   0x2   :  { %v5_v2 = vand.u32 127, %v4_v0  ;;  %s23_s11 = sshll.u32 %s67_s0, 4  ;;  %s25_s1 = sshll.u32 %s90_s1, 4  ;;  %s24_s11 = int_to_ptr.vmem [resolvable:$true] %s23_s11  ;;  %s26_s1 = int_to_ptr.hbm [resolvable:$true] %s25_s1 }
   0x3   :  { %s68_s14 = smov 128   ;;  %s69_s15 = smov 8  }
   0x4   :  { %vm6_vm0 = vcmp.lt.s32.totalorder %v5_v2, 10 }
   0x5   :  { %v7_v3 = vsel %vm6_vm0, 0, %v3_v1  ;;  %v16_v5 = vsel %vm6_vm0, 0, %v35_v4 }
   0x6   :  { %8 = vrot.lane.b32.xlu0 %v7_v3, %s66_s8 }
   0xe   :  { %17 = vrot.lane.b32.xlu0 %v16_v5, %s66_s8 }
  0x78   :  { %v9_v6 = vpop.permute.xlu0 %8 }
  0x79   :  { %10 = vst [vmem:[#allocation5] sm:$0xff] %v9_v6 }
  0x80   :  { %v18_v7 = vpop.permute.xlu0 %17 }
  0x81   :  { %20 = vst [vmem:[#allocation5 + $0x8] sm:$0xff] %v18_v7 }
  0x82   :  { %31 = dma.vmem_to_hbm [thread:$0]  %s24_s11, 256, %s26_s1, [#allocation6], %s68_s14, %s68_s14, %s69_s15  }
  0x83   :  { %64 = dma.done.wait [#allocation6], 256  }
  0x84   :  { %65 = vsyncadd [#allocation6], 4294967040 }
  0x85   :  { %34 = vsyncpa [#allocation6], 1 }

// kernel: _lambda_.1
= control target key start
LH: loop header
LB: loop body
LE: loop exit
PB: predicated region body
PF: predicated region fallthrough
CT: control target
= control target key end

     0   :  { %11 = vsyncpa [#allocation3], 0  ;;  %s2334_s0 = inlined_call_operand.vmem [shape: f32[16,32], index: 0, kind: input, shape index: {}]   ;;  %s2335_s1 = inlined_call_operand.vmem [shape: f32[16,16], index: 1, kind: input, shape index: {}]   ;;  %s2336_s2 = inlined_call_operand.hbm [shape: f32[2,64,128], index: 2, kind: input, shape index: {}]   ;;  %s2337_s3 = inlined_call_operand.vmem [shape: f32[2,160,32], index: 3, kind: input, shape index: {}]   ;;  %s2338_s4 = inlined_call_operand.hbm [shape: f32[2,4,128], index: 4, kind: input, shape index: {}]   ;;  %s2339_s5 = inlined_call_operand.hbm [shape: f32[34,128], index: 5, kind: input, shape index: {}]   ;;  %s2340_s6 = inlined_call_operand.vmem [shape: f32[16,128], index: 6, kind: output, shape index: {}]  }
   0x1   :  { %12 = vsyncpa [#allocation5], 0  ;;  %s36_s23 = sshll.u32 %s2338_s4, 4  ;;  %s1819_s24 = smov [#allocation4]   ;;  %s37_s23 = int_to_ptr.hbm [resolvable:$true] %s36_s23 }
   0x2   :  { %s38_s25 = sshll.u32 %s1819_s24, 4  ;;  %s21_s28 = sshll.u32 %s2336_s2, 4  ;;  %s39_s25 = int_to_ptr.vmem [resolvable:$true] %s38_s25  ;;  %s22_s28 = int_to_ptr.hbm [resolvable:$true] %s21_s28 }
   0x3   :  { %s1820_s29 = smov 64   ;;  %s1821_s30 = smov 4  }
   0x4   :  { %44 = dma.hbm_to_vmem [thread:$0]  %s37_s23, 128, %s39_s25, [#allocation5], %s1820_s29, %s1820_s29, %s1821_s30  }
   0x5   :  { %s1822_s7 = smov [#allocation2]   ;;  %s1823_s9 = smov 128  }
   0x6   :  { %s23_s8 = sshll.u32 %s1822_s7, 4  ;;  %s1824_s10 = smov 8   ;;  %s24_s8 = int_to_ptr.vmem [resolvable:$true] %s23_s8 }
   0x7   :  { %29 = dma.hbm_to_vmem [thread:$0]  %s22_s28, 2048, %s24_s8, [#allocation3], %s1823_s9, %s1823_s9, %s1824_s10  }
   0x8   :  { %s49_s12 = sshll.u32 %s2339_s5, 4  ;;  %s1825_s13 = smov [#allocation6]   ;;  %s50_s12 = int_to_ptr.hbm [resolvable:$true] %s49_s12 }
   0x9   :  { %s51_s2 = sshll.u32 %s1825_s13, 4  ;;  %s52_s2 = int_to_ptr.vmem [resolvable:$true] %s51_s2 }
   0xa   :  { %57 = dma.hbm_to_vmem [thread:$0]  %s50_s12, 640, %s52_s2, [#allocation5], %s1823_s9, %s1823_s9, %s1824_s10  }
   0xb   :  { %1815 = dma.done.wait [#allocation3], 2048  }
   0xc   :  { %1816 = vsyncadd [#allocation3], 4294965248 }
   0xd   :  { %1817 = dma.done.wait [#allocation5], 768  }
   0xe   :  { %1818 = vsyncadd [#allocation5], 4294966528  ;;  %vm103_vm0 = vcmask 261120   ;;  %v1891_v0 = vld [vmem:[%s2334_s0 + $0x8] sm:$0xff]  ;;  %v1898_v2 = vld [vmem:[%s2334_s0] sm:$0xff]  ;;  %v1826_v4 = vmov 32.0  }
   0xf   :  { %v107_v1 = vsel %vm103_vm0, %v1891_v0, 0.0  ;;  %v104_v3 = vsel %vm103_vm0, %v1898_v2, 0.0  ;;  %1649 = vrcp.f32 %v1826_v4  ;;  %v1902_v7 = vld [vmem:[#allocation4] sm:$0xf]  ;;  %s1827_s17 = smov 96   ;;  %v78_v23 = vld [vmem:[#allocation2 + $0x18] sm:$0xff] }
  0x10   :  { %108 = vadd.xlane.f32.xlu0 %v107_v1  ;;  %v1905_v8 = vperm.slane %v1902_v7, 0  ;;  %1584 = vmatpush.msra.mxu3 %v78_v23  ;;  %v77_v24 = vld [vmem:[#allocation2 + $0x10] sm:$0xff]  ;;  %v76_v25 = vld [vmem:[#allocation2 + $0x8] sm:$0xff]  ;;  %v75_v26 = vld [vmem:[#allocation2] sm:$0xff]  ;;  %v164_v54 = vperm.slane %v1902_v7, 2  ;;  %s1828_s0 = smov 120  }
  0x11   :  { %183 = vmatpush.msra.mxu0 %v78_v23  ;;  %s1829_s18 = smov 88   ;;  %s1830_s19 = smov 104   ;;  %vm200_vm8 = vcmask 64512   ;;  %vm236_vm9 = vcmask 130048   ;;  %vm574_vm10 = vcmask 195584  }
  0x12   :  { %159 = vrot.lane.b32.xlu2 %v1905_v8, %s1827_s17  ;;  %1585 = vmatpush.msra.mxu3 %v77_v24  ;;  %s1831_s20 = smov 72   ;;  %s1832_s21 = smov 80  }
  0x13   :  { %184 = vmatpush.msra.mxu0 %v77_v24  ;;  %s1833_s22 = smov 112   ;;  %s1834_s23 = smov 56  }
  0x14   :  { %1586 = vmatpush.msra.mxu3 %v76_v25  ;;  %s1836_s28 = smov 40   ;;  %s1837_s30 = smov 16  }
  0x15   :  { %v1650_v5 = vpop.eup %1649  ;;  %185 = vmatpush.msra.mxu0 %v76_v25  ;;  %v1969_v25 = vld [vmem:[%s2335_s1 + $0x8] sm:$0xff]  ;;  %s1838_s7 = smov 24   ;;  %s1839_s15 = smov 32  }
  0x16   :  { %v111_v6 = vmul.f32 32.0, %v1650_v5  ;;  %vm115_vm1 = vweird.f32 %v1650_v5  ;;  %1587 = vmatpush.msra.mxu3 %v75_v26 }
  0x17   :  { %186 = vmatpush.msra.mxu0 %v75_v26 }
  0x18   :  { %105 = vadd.xlane.f32.xlu0 %v104_v3  ;;  %v112_v9 = vsub.f32 1.0, %v111_v6 }
  0x1a   :  { %v113_v10 = vmul.f32 %v1650_v5, %v112_v9 }
  0x1c   :  { %v114_v11 = vadd.f32 %v1650_v5, %v113_v10 }
  0x1e   :  { %v1909_v12 = vsel %vm115_vm1, %v1650_v5, %v114_v11 }
  0x6c   :  { %v160_v45 = vpop.permute.xlu2 %159 }
  0x83   :  { %v109_v13 = vpop.xlane.xlu0 %108 }
  0x84   :  { %v118_v14 = vmul.f32 %v1909_v12, %v109_v13 }
  0x86   :  { %v120_v15 = vsub.f32 %v1891_v0, %v118_v14 }
  0x88   :  { %v122_v16 = vmul.f32 %v120_v15, %v120_v15 }
  0x8a   :  { %v126_v17 = vsel %vm103_vm0, %v122_v16, 0.0 }
  0x8b   :  { %127 = vadd.xlane.f32.xlu1 %v126_v17  ;;  %v106_v18 = vpop.xlane.xlu0 %105 }
  0x8c   :  { %v117_v19 = vmul.f32 %v1909_v12, %v106_v18 }
  0x8e   :  { %v119_v20 = vsub.f32 %v1898_v2, %v117_v19 }
  0x90   :  { %v121_v21 = vmul.f32 %v119_v20, %v119_v20 }
  0x92   :  { %v123_v22 = vsel %vm103_vm0, %v121_v21, 0.0  ;;  %v1963_v21 = vld [vmem:[%s2335_s1] sm:$0xff]  ;;  %s1835_s1 = smov 48  }
  0x93   :  { %124 = vadd.xlane.f32.xlu1 %v123_v22 }
  0xfe   :  { %v128_v27 = vpop.xlane.xlu1 %127 }
  0xff   :  { %v130_v28 = vmul.f32 %v128_v27, %v1909_v12 }
 0x101   :  { %v132_v29 = vadd.f32 1e-05, %v130_v28 }
 0x103   :  { %1651 = vrsqrt.f32 %v132_v29  ;;  %vm149_vm3 = vweird.f32 %v132_v29 }
 0x106   :  { %v125_v30 = vpop.xlane.xlu1 %124 }
 0x107   :  { %v129_v31 = vmul.f32 %v125_v30, %v1909_v12 }
 0x109   :  { %v1652_v32 = vpop.eup %1651  ;;  %v131_v33 = vadd.f32 1e-05, %v129_v31 }
 0x10a   :  { %v144_v34 = vmul.f32 %v1652_v32, %v132_v29  ;;  %vm150_vm2 = vweird.f32 %v1652_v32 }
 0x10b   :  { %1653 = vrsqrt.f32 %v131_v33  ;;  %vm151_vm4 = vmor %vm149_vm3, %vm150_vm2  ;;  %vm139_vm6 = vweird.f32 %v131_v33 }
 0x10c   :  { %v145_v35 = vmul.f32 %v1652_v32, %v144_v34 }
 0x10e   :  { %v146_v36 = vmul.f32 0.5, %v145_v35 }
 0x110   :  { %v147_v37 = vsub.f32 1.5, %v146_v36 }
 0x111   :  { %v1654_v38 = vpop.eup %1653 }
 0x112   :  { %v148_v39 = vmul.f32 %v1652_v32, %v147_v37  ;;  %v134_v40 = vmul.f32 %v1654_v38, %v131_v33  ;;  %vm140_vm5 = vweird.f32 %v1654_v38 }
 0x113   :  { %vm141_vm7 = vmor %vm139_vm6, %vm140_vm5 }
 0x114   :  { %v135_v41 = vmul.f32 %v1654_v38, %v134_v40  ;;  %v152_v42 = vsel %vm151_vm4, %v1652_v32, %v148_v39 }
 0x115   :  { %v154_v43 = vmul.f32 %v152_v42, %v120_v15 }
 0x116   :  { %v136_v44 = vmul.f32 0.5, %v135_v41 }
 0x117   :  { %v157_v46 = vmul.f32 %v1905_v8, %v154_v43 }
 0x118   :  { %v137_v47 = vsub.f32 1.5, %v136_v44 }
 0x119   :  { %v163_v48 = vadd.f32 %v160_v45, %v157_v46 }
 0x11a   :  { %v138_v49 = vmul.f32 %v1654_v38, %v137_v47 }
 0x11b   :  { %1503 = vmatmul.msk.f32.vlgmr.msra.gmra.mxu3 %vm103_vm0, %v163_v48 }
 0x11c   :  { %v142_v50 = vsel %vm141_vm7, %v1654_v38, %v138_v49 }
 0x11d   :  { %v153_v51 = vmul.f32 %v142_v50, %v119_v20 }
 0x11f   :  { %v156_v52 = vmul.f32 %v1905_v8, %v153_v51 }
 0x121   :  { %v162_v53 = vadd.f32 %v160_v45, %v156_v52 }
 0x123   :  { %1502 = vmatmul.msk.f32.vlgmr.msra.gmra.mxu0 %vm103_vm0, %v162_v53 }
 0x19e   :  { %v191_v57 = vpop.f32.mrf.mxu3 }
 0x19f   :  { %v192_v58 = vadd.f32 %v191_v57, %v164_v54 }
 0x1a0   :  { %v188_v55 = vpop.f32.mrf.mxu0 }
 0x1a1   :  { %v189_v56 = vadd.f32 %v188_v55, %v164_v54 }
 0x1a3   :  { %196 = vrot.lane.b32.xlu2 %v189_v56, %s1827_s17  ;;  %282 = vrot.lane.b32.xlu1 %v189_v56, %s1828_s0  ;;  %v1933_v59 = vpack.i.bf16 %v189_v56, %v192_v58 }
 0x1a4   :  { %286 = vrot.lane.b32.xlu0 %v189_v56, %s1829_s18 }
 0x1ab   :  { %288 = vrot.lane.b32.xlu2 %v192_v58, %s1829_s18  ;;  %458 = vrot.lane.b32.xlu1 %v189_v56, %s1830_s19 }
 0x1ac   :  { %464 = vrot.lane.b32.xlu0 %v192_v58, %s1831_s20 }
 0x1b3   :  { %198 = vrot.lane.b32.xlu2 %v192_v58, %s1827_s17  ;;  %460 = vrot.lane.b32.xlu1 %v192_v58, %s1830_s19 }
 0x1b4   :  { %376 = vrot.lane.b32.xlu0 %v192_v58, %s1832_s21 }
 0x1bb   :  { %284 = vrot.lane.b32.xlu2 %v192_v58, %s1828_s0  ;;  %1615 = vrot.lane.b32.xlu1 %v1933_v59, %s1820_s29 }
 0x1bc   :  { %370 = vrot.lane.b32.xlu0 %v189_v56, %s1833_s22 }
 0x1c3   :  { %462 = vrot.lane.b32.xlu2 %v189_v56, %s1831_s20 }
 0x1cb   :  { %374 = vrot.lane.b32.xlu2 %v189_v56, %s1832_s21 }
 0x1d3   :  { %372 = vrot.lane.b32.xlu2 %v192_v58, %s1833_s22 }
 0x1db   :  { %1610 = vrot.lane.b32.xlu2 %v1933_v59, %s1834_s23 }
 0x1fd   :  { %v197_v60 = vpop.permute.xlu2 %196 }
 0x205   :  { %v289_v61 = vpop.permute.xlu2 %288 }
 0x206   :  { %1510 = vmatpush.xpose.msk.msrb.mxu3 %vm200_vm8, %v289_v61 }
 0x20d   :  { %v199_v62 = vpop.permute.xlu2 %198 }
 0x20e   :  { %1504 = vmatpush.xpose.msk.msra.mxu1 %vm200_vm8, %v199_v62 }
 0x212   :  { %1505 = vmatpush.xpose.msk.msra.mxu1 %vm200_vm8, %v197_v60 }
 0x215   :  { %1506 = vmatmul.msk.f32.vlgmr.msra.gmra.mxu1 %vm200_vm8, %v189_v56  ;;  %v285_v63 = vpop.permute.xlu2 %284  ;;  %v283_v1 = vpop.permute.xlu1 %282 }
 0x216   :  { %v287_v3 = vpop.permute.xlu0 %286 }
 0x217   :  { %1511 = vmatpush.xpose.msk.msrb.mxu3 %vm200_vm8, %v287_v3 }
 0x21a   :  { %1512 = vmatmul.msk.f32.vlgmr.msrb.gmra.mxu3 %vm200_vm8, %v283_v1 }
 0x21d   :  { %1507 = vmatmul.msk.f32.gmra.mxu1 %vm200_vm8, %v192_v58  ;;  %v463_v4 = vpop.permute.xlu2 %462  ;;  %v459_v5 = vpop.permute.xlu1 %458 }
 0x21e   :  { %v465_v6 = vpop.permute.xlu0 %464 }
 0x21f   :  { %1522 = vmatpush.xpose.msk.msra.mxu3 %vm200_vm8, %v465_v6 }
 0x222   :  { %1513 = vmatmul.msk.f32.gmra.mxu3 %vm200_vm8, %v285_v63 }
 0x223   :  { %1523 = vmatpush.xpose.msk.msra.mxu3 %vm200_vm8, %v463_v4 }
 0x225   :  { %v375_v9 = vpop.permute.xlu2 %374  ;;  %v461_v10 = vpop.permute.xlu1 %460 }
 0x226   :  { %v377_v11 = vpop.permute.xlu0 %376 }
 0x227   :  { %1516 = vmatpush.xpose.msk.msrb.mxu0 %vm200_vm8, %v377_v11 }
 0x22a   :  { %1524 = vmatmul.msk.f32.vlgmr.msra.gmra.mxu3 %vm200_vm8, %v459_v5 }
 0x22b   :  { %1517 = vmatpush.xpose.msk.msrb.mxu0 %vm200_vm8, %v375_v9 }
 0x22d   :  { %v373_v13 = vpop.permute.xlu2 %372  ;;  %v1616_v14 = vpop.permute.xlu1 %1615 }
 0x22e   :  { %v371_v15 = vpop.permute.xlu0 %370  ;;  %v1617_v16 = vunpack.i.l.bf16 %v1616_v14  ;;  %v1618_v17 = vunpack.i.h.bf16 %v1616_v14 }
 0x22f   :  { %1518 = vmatmul.msk.f32.vlgmr.msrb.gmra.mxu0 %vm200_vm8, %v371_v15 }
 0x230   :  { %273 = vmatpush.msrb.mxu1 %v1617_v16 }
 0x232   :  { %1525 = vmatmul.msk.f32.gmra.mxu3 %vm200_vm8, %v461_v10  ;;  %274 = vmatpush.msrb.mxu1 %v1618_v17 }
 0x235   :  { %v1611_v18 = vpop.permute.xlu2 %1610 }
 0x236   :  { %v1612_v19 = vunpack.i.l.bf16 %v1611_v18  ;;  %v1613_v20 = vunpack.i.h.bf16 %v1611_v18 }
 0x237   :  { %1519 = vmatmul.msk.f32.gmra.mxu0 %vm200_vm8, %v373_v13 }
 0x238   :  { %361 = vmatpush.msra.mxu2 %v1612_v19 }
 0x23a   :  { %362 = vmatpush.msra.mxu2 %v1613_v20 }
 0x292   :  { %v226_v22 = vpop.f32.mrf.mxu1 }
 0x293   :  { %v227_v23 = vadd.f32 %v226_v22, %v1963_v21 }
 0x295   :  { %v232_v24 = vmul.f32 1.442695, %v227_v23 }
 0x297   :  { %1655 = vpow2.f32 %v232_v24 }
 0x29a   :  { %v229_v26 = vpop.f32.mrf.mxu1 }
 0x29b   :  { %v230_v27 = vadd.f32 %v229_v26, %v1969_v25 }
 0x29d   :  { %v1656_v28 = vpop.eup %1655  ;;  %v234_v29 = vmul.f32 1.442695, %v230_v27  ;;  %v315_v30 = vpop.f32.mrf.mxu3 }
 0x29e   :  { %v316_v31 = vadd.f32 %v315_v30, %v1963_v21  ;;  %v237_v32 = vsel %vm236_vm9, %v1656_v28, 0.0 }
 0x29f   :  { %1657 = vpow2.f32 %v234_v29  ;;  %238 = vadd.xlane.f32.xlu0 %v237_v32 }
 0x2a0   :  { %v321_v33 = vmul.f32 1.442695, %v316_v31 }
 0x2a2   :  { %1659 = vpow2.f32 %v321_v33 }
 0x2a5   :  { %v1658_v34 = vpop.eup %1657  ;;  %v318_v35 = vpop.f32.mrf.mxu3 }
 0x2a6   :  { %v319_v36 = vadd.f32 %v318_v35, %v1969_v25  ;;  %v240_v37 = vsel %vm236_vm9, %v1658_v34, 0.0 }
 0x2a7   :  { %241 = vadd.xlane.f32.xlu0 %v240_v37 }
 0x2a8   :  { %v1660_v38 = vpop.eup %1659  ;;  %v323_v39 = vmul.f32 1.442695, %v319_v36 }
 0x2a9   :  { %v325_v40 = vsel %vm236_vm9, %v1660_v38, 0.0 }
 0x2aa   :  { %1661 = vpow2.f32 %v323_v39  ;;  %326 = vadd.xlane.f32.xlu1 %v325_v40 }
 0x2ac   :  { %v403_v41 = vpop.f32.mrf.mxu0 }
 0x2ad   :  { %v404_v42 = vadd.f32 %v403_v41, %v1963_v21  ;;  %v491_v43 = vpop.f32.mrf.mxu3 }
 0x2ae   :  { %v492_v44 = vadd.f32 %v491_v43, %v1963_v21 }
 0x2af   :  { %v409_v45 = vmul.f32 1.442695, %v404_v42 }
 0x2b0   :  { %v1662_v46 = vpop.eup %1661  ;;  %v497_v47 = vmul.f32 1.442695, %v492_v44  ;;  %v86_v44 = vld [vmem:[%s2337_s3 + $0x18] sm:$0xff] }
 0x2b1   :  { %1663 = vpow2.f32 %v409_v45  ;;  %v328_v48 = vsel %vm236_vm9, %v1662_v46, 0.0  ;;  %v85_v45 = vld [vmem:[%s2337_s3 + $0x10] sm:$0xff]  ;;  %595 = vmatpush.msra.mxu0 %v86_v44 }
 0x2b2   :  { %1665 = vpow2.f32 %v497_v47  ;;  %329 = vadd.xlane.f32.xlu2 %v328_v48  ;;  %v83_v47 = vld [vmem:[%s2337_s3] sm:$0xff] }
 0x2b3   :  { %596 = vmatpush.msra.mxu0 %v85_v45 }
 0x2b4   :  { %v406_v49 = vpop.f32.mrf.mxu0 }
 0x2b5   :  { %v494_v50 = vpop.f32.mrf.mxu3  ;;  %v407_v54 = vadd.f32 %v406_v49, %v1969_v25 }
 0x2b6   :  { %v495_v51 = vadd.f32 %v494_v50, %v1969_v25 }
 0x2b7   :  { %v1664_v52 = vpop.eup %1663  ;;  %v411_v58 = vmul.f32 1.442695, %v407_v54 }
 0x2b8   :  { %v1666_v53 = vpop.eup %1665  ;;  %v499_v55 = vmul.f32 1.442695, %v495_v51  ;;  %v413_v56 = vsel %vm236_vm9, %v1664_v52, 0.0 }
 0x2b9   :  { %v501_v57 = vsel %vm236_vm9, %v1666_v53, 0.0 }
 0x2ba   :  { %1667 = vpow2.f32 %v499_v55  ;;  %502 = vadd.xlane.f32.xlu0 %v501_v57  ;;  %414 = vadd.xlane.f32.xlu2 %v413_v56 }
 0x2bb   :  { %1669 = vpow2.f32 %v411_v58 }
 0x2c0   :  { %v1668_v60 = vpop.eup %1667 }
 0x2c1   :  { %v504_v61 = vsel %vm236_vm9, %v1668_v60, 0.0  ;;  %v1670_v62 = vpop.eup %1669 }
 0x2c2   :  { %505 = vadd.xlane.f32.xlu2 %v504_v61  ;;  %v416_v63 = vsel %vm236_vm9, %v1670_v62, 0.0  ;;  %v608_v61 = vperm.slane %v1902_v7, 1 }
 0x2c3   :  { %1625 = vrot.lane.b32.xlu1 %v1933_v59, %s1835_s1 }
 0x2ca   :  { %417 = vadd.xlane.f32.xlu2 %v416_v63 }
 0x2ce   :  { %1620 = vrot.lane.b32.xlu0 %v1933_v59, %s1836_s28 }
 0x312   :  { %v239_v1 = vpop.xlane.xlu0 %238 }
 0x313   :  { %1671 = vrcp.f32 %v239_v1 }
 0x319   :  { %v1672_v3 = vpop.eup %1671 }
 0x31a   :  { %v242_v4 = vpop.xlane.xlu0 %241  ;;  %v245_v5 = vmul.f32 %v1672_v3, %v1656_v28 }
 0x31b   :  { %1673 = vrcp.f32 %v242_v4 }
 0x31c   :  { %1508 = vmatmul.msk.f32.vlgmr.msrb.gmra.mxu1 %vm236_vm9, %v245_v5 }
 0x31d   :  { %v327_v6 = vpop.xlane.xlu1 %326 }
 0x31e   :  { %1675 = vrcp.f32 %v327_v6 }
 0x321   :  { %v1674_v9 = vpop.eup %1673 }
 0x322   :  { %v246_v10 = vmul.f32 %v1674_v9, %v1658_v34 }
 0x324   :  { %v1676_v11 = vpop.eup %1675  ;;  %1509 = vmatmul.msk.f32.gmra.mxu1 %vm236_vm9, %v246_v10 }
 0x325   :  { %v330_v13 = vpop.xlane.xlu2 %329  ;;  %v333_v14 = vmul.f32 %v1676_v11, %v1660_v38 }
 0x326   :  { %1677 = vrcp.f32 %v330_v13 }
 0x327   :  { %1514 = vmatmul.msk.f32.vlgmr.msra.gmra.mxu2 %vm236_vm9, %v333_v14 }
 0x32c   :  { %v1678_v59 = vpop.eup %1677 }
 0x32d   :  { %v415_v15 = vpop.xlane.xlu2 %414  ;;  %v334_v16 = vmul.f32 %v1678_v59, %v1662_v46  ;;  %v503_v22 = vpop.xlane.xlu0 %502  ;;  %v84_v46 = vld [vmem:[%s2337_s3 + $0x8] sm:$0xff] }
 0x32e   :  { %1679 = vrcp.f32 %v415_v15  ;;  %597 = vmatpush.msra.mxu0 %v84_v46 }
 0x32f   :  { %1515 = vmatmul.msk.f32.gmra.mxu2 %vm236_vm9, %v334_v16  ;;  %1681 = vrcp.f32 %v503_v22  ;;  %v79_v22 = vld [vmem:[#allocation2 + $0x20] sm:$0xff] }
 0x330   :  { %598 = vmatpush.msra.mxu0 %v83_v47 }
 0x334   :  { %v1680_v19 = vpop.eup %1679 }
 0x335   :  { %v1626_v17 = vpop.permute.xlu1 %1625  ;;  %v506_v18 = vpop.xlane.xlu2 %505  ;;  %v421_v24 = vmul.f32 %v1680_v19, %v1664_v52  ;;  %v81_v19 = vld [vmem:[#allocation2 + $0x30] sm:$0xff] }
 0x336   :  { %v1627_v20 = vunpack.i.l.bf16 %v1626_v17  ;;  %v1628_v23 = vunpack.i.h.bf16 %v1626_v17  ;;  %v1682_v28 = vpop.eup %1681 }
 0x337   :  { %v509_v32 = vmul.f32 %v1682_v28, %v1666_v53  ;;  %v100_v28 = vld [vmem:[%s2337_s3 + $0x88] sm:$0xff] }
 0x338   :  { %449 = vmatpush.msra.mxu1 %v1627_v20  ;;  %v80_v20 = vld [vmem:[#allocation2 + $0x28] sm:$0xff] }
 0x33a   :  { %450 = vmatpush.msra.mxu1 %v1628_v23 }
 0x33b   :  { %1520 = vmatmul.msk.f32.vlgmr.msra.gmra.mxu1 %vm236_vm9, %v421_v24 }
 0x33d   :  { %v418_v26 = vpop.xlane.xlu2 %417 }
 0x33e   :  { %1683 = vrcp.f32 %v418_v26 }
 0x33f   :  { %1685 = vrcp.f32 %v506_v18  ;;  %v82_v18 = vld [vmem:[#allocation2 + $0x38] sm:$0xff] }
 0x340   :  { %v1621_v27 = vpop.permute.xlu0 %1620  ;;  %684 = vmatpush.msrb.mxu1 %v82_v18 }
 0x341   :  { %v1622_v29 = vunpack.i.l.bf16 %v1621_v27  ;;  %v1623_v30 = vunpack.i.h.bf16 %v1621_v27  ;;  %v102_v27 = vld [vmem:[%s2337_s3 + $0x98] sm:$0xff] }
 0x342   :  { %685 = vmatpush.msrb.mxu1 %v81_v19  ;;  %713 = vmatpush.msrb.mxu3 %v102_v27 }
 0x343   :  { %537 = vmatpush.msrb.mxu2 %v1622_v29 }
 0x344   :  { %v1684_v31 = vpop.eup %1683  ;;  %686 = vmatpush.msrb.mxu1 %v80_v20 }
 0x345   :  { %538 = vmatpush.msrb.mxu2 %v1623_v30  ;;  %v422_v33 = vmul.f32 %v1684_v31, %v1670_v62  ;;  %v1686_v34 = vpop.eup %1685  ;;  %v99_v31 = vld [vmem:[%s2337_s3 + $0x80] sm:$0xff] }
 0x346   :  { %1526 = vmatmul.msk.f32.vlgmr.msrb.gmra.mxu2 %vm236_vm9, %v509_v32  ;;  %v510_v35 = vmul.f32 %v1686_v34, %v1668_v60  ;;  %687 = vmatpush.msrb.mxu1 %v79_v22 }
 0x347   :  { %1521 = vmatmul.msk.f32.gmra.mxu1 %vm236_vm9, %v422_v33 }
 0x34e   :  { %1527 = vmatmul.msk.f32.gmra.mxu2 %vm236_vm9, %v510_v35 }
 0x399   :  { %v276_v36 = vpop.f32.mrf.mxu1 }
 0x3a1   :  { %v279_v38 = vpop.f32.mrf.mxu1 }
 0x3aa   :  { %v364_v37 = vpop.f32.mrf.mxu2 }
 0x3ab   :  { %548 = vrot.lane.b32.xlu1 %v364_v37, %s1824_s10 }
 0x3b2   :  { %v367_v39 = vpop.f32.mrf.mxu2 }
 0x3b3   :  { %550 = vrot.lane.b32.xlu1 %v367_v39, %s1824_s10 }
 0x3b8   :  { %v452_v40 = vpop.f32.mrf.mxu1 }
 0x3b9   :  { %556 = vrot.lane.b32.xlu2 %v452_v40, %s1837_s30 }
 0x3c4   :  { %v455_v42 = vpop.f32.mrf.mxu1 }
 0x3c9   :  { %v540_v41 = vpop.f32.mrf.mxu2 }
 0x3ca   :  { %564 = vrot.lane.b32.xlu0 %v540_v41, %s1838_s7 }
 0x3d1   :  { %v543_v43 = vpop.f32.mrf.mxu2 }
 0x3d2   :  { %558 = vrot.lane.b32.xlu0 %v455_v42, %s1837_s30  ;;  %566 = vrot.lane.b32.xlu1 %v543_v43, %s1838_s7 }
 0x413   :  { %v557_v50 = vpop.permute.xlu2 %556 }
 0x41d   :  { %v549_v48 = vpop.permute.xlu1 %548 }
 0x41e   :  { %v570_v49 = vsel %vm200_vm8, %v276_v36, %v549_v48 }
 0x41f   :  { %v572_v52 = vsel %vm236_vm9, %v570_v49, %v557_v50 }
 0x425   :  { %v551_v51 = vpop.permute.xlu1 %550 }
 0x426   :  { %v571_v55 = vsel %vm200_vm8, %v279_v38, %v551_v51 }
 0x43c   :  { %v565_v53 = vpop.permute.xlu0 %564 }
 0x43d   :  { %v575_v54 = vsel %vm574_vm10, %v572_v52, %v565_v53 }
 0x43e   :  { %1528 = vmatmul.msk.f32.vlgmr.msra.gmra.mxu0 %vm103_vm0, %v575_v54 }
 0x444   :  { %v559_v56 = vpop.permute.xlu0 %558  ;;  %v567_v57 = vpop.permute.xlu1 %566 }
 0x445   :  { %v573_v58 = vsel %vm236_vm9, %v571_v55, %v559_v56  ;;  %v98_v55 = vld [vmem:[%s2337_s3 + $0x78] sm:$0xff]  ;;  %v97_v56 = vld [vmem:[%s2337_s3 + $0x70] sm:$0xff] }
 0x446   :  { %v576_v60 = vsel %vm574_vm10, %v573_v58, %v567_v57  ;;  %v96_v57 = vld [vmem:[%s2337_s3 + $0x68] sm:$0xff]  ;;  %v95_v58 = vld [vmem:[%s2337_s3 + $0x60] sm:$0xff] }
 0x447   :  { %1529 = vmatmul.msk.f32.gmra.mxu0 %vm103_vm0, %v576_v60  ;;  %v94_v60 = vld [vmem:[%s2337_s3 + $0x58] sm:$0xff] }
 0x4bb   :  { %v600_v62 = vpop.f32.mrf.mxu0 }
 0x4bc   :  { %v606_v63 = vadd.f32 %v600_v62, %v1898_v2  ;;  %v92_v62 = vld [vmem:[%s2337_s3 + $0x48] sm:$0xff] }
 0x4be   :  { %v2026_v1 = vadd.f32 %v608_v61, %v606_v63  ;;  %v91_v63 = vld [vmem:[%s2337_s3 + $0x40] sm:$0xff] }
 0x4c0   :  { %v611_v3 = vsel %vm103_vm0, %v2026_v1, 0.0 }
 0x4c1   :  { %612 = vadd.xlane.f32.xlu0 %v611_v3  ;;  %v90_v3 = vld [vmem:[%s2337_s3 + $0x38] sm:$0xff] }
 0x4c4   :  { %v603_v4 = vpop.f32.mrf.mxu0 }
 0x4c5   :  { %v607_v5 = vadd.f32 %v603_v4, %v1891_v0  ;;  %v89_v4 = vld [vmem:[%s2337_s3 + $0x30] sm:$0xff] }
 0x4c7   :  { %v2031_v6 = vadd.f32 %v608_v61, %v607_v5  ;;  %v88_v5 = vld [vmem:[%s2337_s3 + $0x28] sm:$0xff] }
 0x4c9   :  { %v614_v9 = vsel %vm103_vm0, %v2031_v6, 0.0 }
 0x4ca   :  { %615 = vadd.xlane.f32.xlu1 %v614_v9  ;;  %v87_v9 = vld [vmem:[%s2337_s3 + $0x20] sm:$0xff] }
 0x4e3   :  { %655 = vrot.lane.b32.xlu1 %v1905_v8, %s1820_s29 }
 0x534   :  { %v613_v10 = vpop.xlane.xlu0 %612 }
 0x535   :  { %v617_v2 = vmul.f32 %v613_v10, %v1909_v12  ;;  %v665_v10 = vperm.slane %v1902_v7, 3 }
 0x537   :  { %v619_v11 = vsub.f32 %v2026_v1, %v617_v2 }
 0x539   :  { %v621_v13 = vmul.f32 %v619_v11, %v619_v11 }
 0x53b   :  { %v623_v14 = vsel %vm103_vm0, %v621_v13, 0.0 }
 0x53c   :  { %624 = vadd.xlane.f32.xlu2 %v623_v14 }
 0x53d   :  { %v616_v59 = vpop.xlane.xlu1 %615 }
 0x53e   :  { %v618_v0 = vmul.f32 %v616_v59, %v1909_v12 }
 0x540   :  { %v620_v15 = vsub.f32 %v2031_v6, %v618_v0 }
 0x542   :  { %v622_v16 = vmul.f32 %v620_v15, %v620_v15 }
 0x544   :  { %v626_v17 = vsel %vm103_vm0, %v622_v16, 0.0 }
 0x545   :  { %627 = vadd.xlane.f32.xlu0 %v626_v17 }
 0x554   :  { %660 = vrot.lane.b32.xlu2 %v1905_v8, %s1839_s15  ;;  %v101_v8 = vld [vmem:[%s2337_s3 + $0x90] sm:$0xff] }
 0x555   :  { %714 = vmatpush.msrb.mxu3 %v101_v8  ;;  %v656_v42 = vpop.permute.xlu1 %655 }
 0x557   :  { %715 = vmatpush.msrb.mxu3 %v100_v28 }
 0x559   :  { %739 = vrot.lane.b32.xlu0 %v608_v61, %s1827_s17  ;;  %716 = vmatpush.msrb.mxu3 %v99_v31  ;;  %v93_v61 = vld [vmem:[%s2337_s3 + $0x50] sm:$0xff] }
 0x55b   :  { %717 = vmatpush.msrb.mxu3 %v98_v55 }
 0x55d   :  { %718 = vmatpush.msrb.mxu3 %v97_v56 }
 0x55f   :  { %719 = vmatpush.msrb.mxu3 %v96_v57 }
 0x561   :  { %720 = vmatpush.msrb.mxu3 %v95_v58 }
 0x563   :  { %721 = vmatpush.msrb.mxu3 %v94_v60 }
 0x565   :  { %722 = vmatpush.msrb.mxu3 %v93_v61 }
 0x567   :  { %723 = vmatpush.msrb.mxu3 %v92_v62 }
 0x569   :  { %724 = vmatpush.msrb.mxu3 %v91_v63 }
 0x56b   :  { %725 = vmatpush.msrb.mxu3 %v90_v3 }
 0x56d   :  { %726 = vmatpush.msrb.mxu3 %v89_v4 }
 0x56f   :  { %727 = vmatpush.msrb.mxu3 %v88_v5 }
 0x571   :  { %728 = vmatpush.msrb.mxu3 %v87_v9 }
 0x5af   :  { %v625_v23 = vpop.xlane.xlu2 %624 }
 0x5b0   :  { %v629_v24 = vmul.f32 %v625_v23, %v1909_v12 }
 0x5b2   :  { %v631_v26 = vadd.f32 1e-05, %v629_v24 }
 0x5b4   :  { %1687 = vrsqrt.f32 %v631_v26  ;;  %vm639_vm12 = vweird.f32 %v631_v26 }
 0x5b7   :  { %v661_v45 = vpop.permute.xlu2 %660 }
 0x5b8   :  { %v628_v29 = vpop.xlane.xlu0 %627 }
 0x5b9   :  { %v630_v30 = vmul.f32 %v628_v29, %v1909_v12 }
 0x5ba   :  { %v1688_v32 = vpop.eup %1687 }
 0x5bb   :  { %v634_v33 = vmul.f32 %v1688_v32, %v631_v26  ;;  %v632_v34 = vadd.f32 1e-05, %v630_v30  ;;  %vm640_vm11 = vweird.f32 %v1688_v32 }
 0x5bc   :  { %vm641_vm13 = vmor %vm639_vm12, %vm640_vm11 }
 0x5bd   :  { %v635_v35 = vmul.f32 %v1688_v32, %v634_v33  ;;  %1689 = vrsqrt.f32 %v632_v34  ;;  %vm649_vm15 = vweird.f32 %v632_v34 }
 0x5bf   :  { %v636_v36 = vmul.f32 0.5, %v635_v35 }
 0x5c1   :  { %v637_v37 = vsub.f32 1.5, %v636_v36 }
 0x5c3   :  { %v1690_v38 = vpop.eup %1689  ;;  %v638_v39 = vmul.f32 %v1688_v32, %v637_v37 }
 0x5c4   :  { %v644_v40 = vmul.f32 %v1690_v38, %v632_v34  ;;  %vm650_vm14 = vweird.f32 %v1690_v38 }
 0x5c5   :  { %v642_v41 = vsel %vm641_vm13, %v1688_v32, %v638_v39  ;;  %vm651_vm1 = vmor %vm649_vm15, %vm650_vm14 }
 0x5c6   :  { %v645_v43 = vmul.f32 %v1690_v38, %v644_v40  ;;  %v653_v44 = vmul.f32 %v642_v41, %v619_v11  ;;  %v2109_v40 = vld [vmem:[#allocation4 + $0x4] sm:$0xf] }
 0x5c7   :  { %v2112_v41 = vperm.slane %v2109_v40, 0 }
 0x5c8   :  { %v646_v46 = vmul.f32 0.5, %v645_v43  ;;  %v658_v47 = vmul.f32 %v656_v42, %v653_v44 }
 0x5ca   :  { %v647_v48 = vsub.f32 1.5, %v646_v46  ;;  %v663_v49 = vadd.f32 %v661_v45, %v658_v47 }
 0x5cb   :  { %v740_v32 = vpop.permute.xlu0 %739 }
 0x5cc   :  { %v648_v50 = vmul.f32 %v1690_v38, %v647_v48  ;;  %1530 = vmatmul.msk.f32.vlgmr.msrb.gmra.mxu1 %vm103_vm0, %v663_v49 }
 0x5ce   :  { %v652_v51 = vsel %vm651_vm1, %v1690_v38, %v648_v50  ;;  %v750_v50 = vld [vmem:[#allocation2 + $0x58] sm:$0xff] }
 0x5cf   :  { %v654_v52 = vmul.f32 %v652_v51, %v620_v15  ;;  %848 = vmatpush.msra.mxu2 %v750_v50  ;;  %v749_v51 = vld [vmem:[#allocation2 + $0x50] sm:$0xff] }
 0x5d1   :  { %v659_v53 = vmul.f32 %v656_v42, %v654_v52  ;;  %849 = vmatpush.msra.mxu2 %v749_v51  ;;  %v748_v52 = vld [vmem:[#allocation2 + $0x48] sm:$0xff] }
 0x5d3   :  { %v664_v54 = vadd.f32 %v661_v45, %v659_v53  ;;  %850 = vmatpush.msra.mxu2 %v748_v52  ;;  %v747_v53 = vld [vmem:[#allocation2 + $0x40] sm:$0xff] }
 0x5d5   :  { %1531 = vmatmul.msk.f32.gmra.mxu1 %vm103_vm0, %v664_v54  ;;  %851 = vmatpush.msra.mxu2 %v747_v53 }
 0x649   :  { %v689_v2 = vpop.f32.mrf.mxu1 }
 0x64a   :  { %v690_v11 = vadd.f32 %v689_v2, %v665_v10 }
 0x64c   :  { %v697_v13 = vmul.f32 %v690_v11, %v690_v11  ;;  %v695_v24 = vmul.f32 0.5, %v690_v11 }
 0x64e   :  { %v699_v14 = vmul.f32 %v697_v13, %v690_v11 }
 0x650   :  { %v701_v59 = vmul.f32 0.044715, %v699_v14 }
 0x652   :  { %v703_v0 = vadd.f32 %v701_v59, %v690_v11  ;;  %v692_v15 = vpop.f32.mrf.mxu1 }
 0x653   :  { %v693_v16 = vadd.f32 %v692_v15, %v665_v10 }
 0x654   :  { %v705_v17 = vmul.f32 0.7978846, %v703_v0 }
 0x655   :  { %v698_v18 = vmul.f32 %v693_v16, %v693_v16  ;;  %v696_v28 = vmul.f32 0.5, %v693_v16 }
 0x656   :  { %1691 = vtanh.f32 %v705_v17 }
 0x657   :  { %v700_v19 = vmul.f32 %v698_v18, %v693_v16 }
 0x659   :  { %v702_v20 = vmul.f32 0.044715, %v700_v19 }
 0x65b   :  { %v704_v22 = vadd.f32 %v702_v20, %v693_v16 }
 0x65c   :  { %v1692_v23 = vpop.eup %1691 }
 0x65d   :  { %v709_v26 = vadd.f32 1.0, %v1692_v23  ;;  %v706_v27 = vmul.f32 0.7978846, %v704_v22  ;;  %v829_v23 = vperm.slane %v2109_v40, 2 }
 0x65f   :  { %v711_v8 = vmul.f32 %v709_v26, %v695_v24  ;;  %1693 = vtanh.f32 %v706_v27 }
 0x661   :  { %729 = vmatmul.f32.vlgmr.msrb.gmra.mxu3 %v711_v8 }
 0x665   :  { %v1694_v7 = vpop.eup %1693 }
 0x666   :  { %v710_v29 = vadd.f32 1.0, %v1694_v7 }
 0x668   :  { %v712_v30 = vmul.f32 %v710_v29, %v696_v28 }
 0x66a   :  { %732 = vmatmul.f32.gmra.mxu3 %v712_v30 }
 0x6e4   :  { %v730_v31 = vpop.f32.mrf.mxu3 }
 0x6e5   :  { %v736_v33 = vadd.f32 %v730_v31, %v2026_v1 }
 0x6e7   :  { %v2100_v34 = vadd.f32 %v740_v32, %v736_v33 }
 0x6e9   :  { %v776_v35 = vsel %vm103_vm0, %v2100_v34, 0.0 }
 0x6ea   :  { %777 = vadd.xlane.f32.xlu1 %v776_v35 }
 0x6ed   :  { %v733_v36 = vpop.f32.mrf.mxu3 }
 0x6ee   :  { %v737_v37 = vadd.f32 %v733_v36, %v2031_v6 }
 0x6f0   :  { %v2105_v38 = vadd.f32 %v740_v32, %v737_v37 }
 0x6f2   :  { %v779_v39 = vsel %vm103_vm0, %v2105_v38, 0.0 }
 0x6f3   :  { %780 = vadd.xlane.f32.xlu0 %v779_v39 }
 0x707   :  { %824 = vrot.lane.b32.xlu0 %v2112_v41, %s1827_s17 }
 0x75d   :  { %v778_v1 = vpop.xlane.xlu1 %777 }
 0x75e   :  { %v782_v42 = vmul.f32 %v778_v1, %v1909_v12 }
 0x760   :  { %v784_v43 = vsub.f32 %v2100_v34, %v782_v42 }
 0x762   :  { %v786_v6 = vmul.f32 %v784_v43, %v784_v43 }
 0x764   :  { %v788_v44 = vsel %vm103_vm0, %v786_v6, 0.0 }
 0x765   :  { %789 = vadd.xlane.f32.xlu2 %v788_v44 }
 0x766   :  { %v781_v45 = vpop.xlane.xlu0 %780 }
 0x767   :  { %v783_v46 = vmul.f32 %v781_v45, %v1909_v12 }
 0x769   :  { %v785_v47 = vsub.f32 %v2105_v38, %v783_v46 }
 0x76b   :  { %v787_v48 = vmul.f32 %v785_v47, %v785_v47 }
 0x76d   :  { %v791_v49 = vsel %vm103_vm0, %v787_v48, 0.0 }
 0x76e   :  { %792 = vadd.xlane.f32.xlu1 %v791_v49 }
 0x779   :  { %v825_v14 = vpop.permute.xlu0 %824 }
 0x7d8   :  { %v790_v54 = vpop.xlane.xlu2 %789 }
 0x7d9   :  { %v794_v55 = vmul.f32 %v790_v54, %v1909_v12 }
 0x7db   :  { %v796_v56 = vadd.f32 1e-05, %v794_v55 }
 0x7dd   :  { %1695 = vrsqrt.f32 %v796_v56  ;;  %vm804_vm3 = vweird.f32 %v796_v56 }
 0x7e1   :  { %v793_v57 = vpop.xlane.xlu1 %792 }
 0x7e2   :  { %v795_v58 = vmul.f32 %v793_v57, %v1909_v12 }
 0x7e3   :  { %v1696_v60 = vpop.eup %1695 }
 0x7e4   :  { %v799_v61 = vmul.f32 %v1696_v60, %v796_v56  ;;  %v797_v62 = vadd.f32 1e-05, %v795_v58  ;;  %vm805_vm2 = vweird.f32 %v1696_v60 }
 0x7e5   :  { %vm806_vm4 = vmor %vm804_vm3, %vm805_vm2 }
 0x7e6   :  { %v800_v63 = vmul.f32 %v1696_v60, %v799_v61  ;;  %1697 = vrsqrt.f32 %v797_v62  ;;  %vm814_vm6 = vweird.f32 %v797_v62 }
 0x7e8   :  { %v801_v3 = vmul.f32 0.5, %v800_v63 }
 0x7ea   :  { %v802_v4 = vsub.f32 1.5, %v801_v3 }
 0x7ec   :  { %v1698_v5 = vpop.eup %1697  ;;  %v803_v9 = vmul.f32 %v1696_v60, %v802_v4 }
 0x7ed   :  { %v809_v10 = vmul.f32 %v1698_v5, %v797_v62  ;;  %vm815_vm5 = vweird.f32 %v1698_v5 }
 0x7ee   :  { %v807_v2 = vsel %vm806_vm4, %v1696_v60, %v803_v9  ;;  %vm816_vm7 = vmor %vm814_vm6, %vm815_vm5 }
 0x7ef   :  { %v810_v11 = vmul.f32 %v1698_v5, %v809_v10  ;;  %v818_v13 = vmul.f32 %v807_v2, %v784_v43 }
 0x7f1   :  { %v811_v59 = vmul.f32 0.5, %v810_v11  ;;  %v821_v0 = vmul.f32 %v2112_v41, %v818_v13 }
 0x7f3   :  { %v812_v15 = vsub.f32 1.5, %v811_v59  ;;  %v827_v16 = vadd.f32 %v825_v14, %v821_v0 }
 0x7f5   :  { %v813_v17 = vmul.f32 %v1698_v5, %v812_v15  ;;  %1552 = vmatmul.msk.f32.vlgmr.msra.gmra.mxu2 %vm103_vm0, %v827_v16 }
 0x7f7   :  { %v817_v18 = vsel %vm816_vm7, %v1698_v5, %v813_v17 }
 0x7f8   :  { %v819_v19 = vmul.f32 %v817_v18, %v785_v47 }
 0x7fa   :  { %v822_v20 = vmul.f32 %v2112_v41, %v819_v19 }
 0x7fc   :  { %v828_v22 = vadd.f32 %v825_v14, %v822_v20 }
 0x7fe   :  { %1553 = vmatmul.msk.f32.gmra.mxu2 %vm103_vm0, %v828_v22 }
 0x878   :  { %v853_v24 = vpop.f32.mrf.mxu2 }
 0x879   :  { %v2129_v26 = vadd.f32 %v853_v24, %v829_v23 }
 0x87b   :  { %861 = vrot.lane.b32.xlu1 %v2129_v26, %s1827_s17 }
 0x881   :  { %v856_v27 = vpop.f32.mrf.mxu2 }
 0x882   :  { %v857_v8 = vadd.f32 %v856_v27, %v829_v23 }
 0x883   :  { %949 = vrot.lane.b32.xlu1 %v2129_v26, %s1829_s18 }
 0x884   :  { %1039 = vrot.lane.b32.xlu0 %v857_v8, %s1832_s21  ;;  %863 = vrot.lane.b32.xlu2 %v857_v8, %s1827_s17  ;;  %v2143_v7 = vpack.i.bf16 %v2129_v26, %v857_v8 }
 0x88b   :  { %945 = vrot.lane.b32.xlu1 %v2129_v26, %s1828_s0 }
 0x88c   :  { %951 = vrot.lane.b32.xlu2 %v857_v8, %s1829_s18 }
 0x893   :  { %1037 = vrot.lane.b32.xlu1 %v2129_v26, %s1832_s21 }
 0x89b   :  { %1630 = vrot.lane.b32.xlu1 %v2143_v7, %s1820_s29 }
 0x8a3   :  { %947 = vrot.lane.b32.xlu1 %v857_v8, %s1828_s0 }
 0x8ab   :  { %1127 = vrot.lane.b32.xlu1 %v857_v8, %s1831_s20 }
 0x8b3   :  { %1033 = vrot.lane.b32.xlu1 %v2129_v26, %s1833_s22 }
 0x8bb   :  { %1035 = vrot.lane.b32.xlu1 %v857_v8, %s1833_s22 }
 0x8de   :  { %v864_v28 = vpop.permute.xlu2 %863 }
 0x8df   :  { %1554 = vmatpush.xpose.msk.msrb.mxu0 %vm200_vm8, %v864_v28 }
 0x8e6   :  { %v952_v29 = vpop.permute.xlu2 %951 }
 0x8e7   :  { %1560 = vmatpush.xpose.msk.msrb.mxu2 %vm200_vm8, %v952_v29 }
 0x8ed   :  { %v862_v30 = vpop.permute.xlu1 %861 }
 0x8ee   :  { %1555 = vmatpush.xpose.msk.msrb.mxu0 %vm200_vm8, %v862_v30 }
 0x8f1   :  { %1556 = vmatmul.msk.f32.vlgmr.msrb.gmra.mxu0 %vm200_vm8, %v2129_v26 }
 0x8f5   :  { %v950_v31 = vpop.permute.xlu1 %949 }
 0x8f6   :  { %1561 = vmatpush.xpose.msk.msrb.mxu2 %vm200_vm8, %v950_v31  ;;  %v1040_v39 = vpop.permute.xlu0 %1039 }
 0x8f9   :  { %1557 = vmatmul.msk.f32.gmra.mxu0 %vm200_vm8, %v857_v8 }
 0x8fd   :  { %v946_v32 = vpop.permute.xlu1 %945 }
 0x8fe   :  { %1562 = vmatmul.msk.f32.vlgmr.msrb.gmra.mxu2 %vm200_vm8, %v946_v32 }
 0x905   :  { %v1038_v33 = vpop.permute.xlu1 %1037 }
 0x90d   :  { %v1631_v35 = vpop.permute.xlu1 %1630 }
 0x90e   :  { %v1632_v36 = vunpack.i.l.bf16 %v1631_v35  ;;  %v1633_v37 = vunpack.i.h.bf16 %v1631_v35 }
 0x910   :  { %936 = vmatpush.msra.mxu1 %v1632_v36 }
 0x912   :  { %937 = vmatpush.msra.mxu1 %v1633_v37 }
 0x914   :  { %1566 = vmatpush.xpose.msk.msrb.mxu1 %vm200_vm8, %v1040_v39 }
 0x915   :  { %v948_v1 = vpop.permute.xlu1 %947 }
 0x916   :  { %1563 = vmatmul.msk.f32.gmra.mxu2 %vm200_vm8, %v948_v1 }
 0x918   :  { %1567 = vmatpush.xpose.msk.msrb.mxu1 %vm200_vm8, %v1038_v33 }
 0x91d   :  { %v1128_v42 = vpop.permute.xlu1 %1127 }
 0x91e   :  { %1572 = vmatpush.xpose.msk.msra.mxu2 %vm200_vm8, %v1128_v42 }
 0x925   :  { %v1034_v9 = vpop.permute.xlu1 %1033 }
 0x92d   :  { %v1036_v13 = vpop.permute.xlu1 %1035 }
 0x96e   :  { %v890_v43 = vpop.f32.mrf.mxu0 }
 0x96f   :  { %v891_v6 = vadd.f32 %v890_v43, %v1963_v21 }
 0x971   :  { %v896_v44 = vmul.f32 1.442695, %v891_v6 }
 0x973   :  { %1699 = vpow2.f32 %v896_v44 }
 0x976   :  { %v893_v45 = vpop.f32.mrf.mxu0 }
 0x977   :  { %v894_v46 = vadd.f32 %v893_v45, %v1969_v25 }
 0x979   :  { %v1700_v47 = vpop.eup %1699  ;;  %v898_v48 = vmul.f32 1.442695, %v894_v46 }
 0x97a   :  { %v900_v49 = vsel %vm236_vm9, %v1700_v47, 0.0 }
 0x97b   :  { %1701 = vpow2.f32 %v898_v48  ;;  %901 = vadd.xlane.f32.xlu0 %v900_v49 }
 0x981   :  { %v1702_v50 = vpop.eup %1701  ;;  %v978_v51 = vpop.f32.mrf.mxu2 }
 0x982   :  { %v979_v52 = vadd.f32 %v978_v51, %v1963_v21  ;;  %v903_v53 = vsel %vm236_vm9, %v1702_v50, 0.0 }
 0x983   :  { %904 = vadd.xlane.f32.xlu2 %v903_v53 }
 0x984   :  { %v984_v54 = vmul.f32 1.442695, %v979_v52 }
 0x986   :  { %1703 = vpow2.f32 %v984_v54 }
 0x98c   :  { %v1704_v55 = vpop.eup %1703 }
 0x98d   :  { %v988_v56 = vsel %vm236_vm9, %v1704_v55, 0.0 }
 0x98e   :  { %989 = vadd.xlane.f32.xlu1 %v988_v56 }
 0x98f   :  { %1121 = vrot.lane.b32.xlu0 %v2129_v26, %s1830_s19 }
 0x997   :  { %1123 = vrot.lane.b32.xlu0 %v857_v8, %s1830_s19 }
 0x999   :  { %v981_v57 = vpop.f32.mrf.mxu2 }
 0x99a   :  { %v982_v58 = vadd.f32 %v981_v57, %v1969_v25 }
 0x99b   :  { %1125 = vrot.lane.b32.xlu2 %v2129_v26, %s1831_s20 }
 0x99c   :  { %v986_v60 = vmul.f32 1.442695, %v982_v58 }
 0x99e   :  { %1705 = vpow2.f32 %v986_v60 }
 0x99f   :  { %1635 = vrot.lane.b32.xlu0 %v2143_v7, %s1834_s23 }
 0x9a4   :  { %v1706_v61 = vpop.eup %1705 }
 0x9a5   :  { %v991_v62 = vsel %vm236_vm9, %v1706_v61, 0.0 }
 0x9a7   :  { %1640 = vrot.lane.b32.xlu1 %v2143_v7, %s1835_s1 }
 0x9c4   :  { %992 = vadd.xlane.f32.xlu2 %v991_v62 }
 0x9ee   :  { %v902_v63 = vpop.xlane.xlu0 %901 }
 0x9ef   :  { %1707 = vrcp.f32 %v902_v63 }
 0x9f5   :  { %v1708_v3 = vpop.eup %1707 }
 0x9f6   :  { %v908_v4 = vmul.f32 %v1708_v3, %v1700_v47  ;;  %v905_v5 = vpop.xlane.xlu2 %904 }
 0x9f7   :  { %1709 = vrcp.f32 %v905_v5 }
 0x9f8   :  { %1558 = vmatmul.msk.f32.vlgmr.msra.gmra.mxu1 %vm236_vm9, %v908_v4 }
 0x9fd   :  { %v1710_v10 = vpop.eup %1709 }
 0x9fe   :  { %v1126_v2 = vpop.permute.xlu2 %1125  ;;  %v909_v11 = vmul.f32 %v1710_v10, %v1702_v50 }
 0x9ff   :  { %1573 = vmatpush.xpose.msk.msra.mxu2 %vm200_vm8, %v1126_v2 }
 0xa00   :  { %1559 = vmatmul.msk.f32.gmra.mxu1 %vm236_vm9, %v909_v11  ;;  %v1535_v11 = vld [vmem:[%s2337_s3 + $0xb8] sm:$0xff] }
 0xa01   :  { %v1122_v14 = vpop.permute.xlu0 %1121  ;;  %v990_v59 = vpop.xlane.xlu1 %989  ;;  %1257 = vmatpush.msra.mxu1 %v1535_v11 }
 0xa02   :  { %1574 = vmatmul.msk.f32.vlgmr.msra.gmra.mxu2 %vm200_vm8, %v1122_v14  ;;  %1711 = vrcp.f32 %v990_v59  ;;  %v1533_v14 = vld [vmem:[%s2337_s3 + $0xa8] sm:$0xff]  ;;  %v1532_v59 = vld [vmem:[%s2337_s3 + $0xa0] sm:$0xff] }
 0xa08   :  { %1568 = vmatmul.msk.f32.vlgmr.msrb.gmra.mxu1 %vm200_vm8, %v1034_v9  ;;  %v1712_v16 = vpop.eup %1711 }
 0xa09   :  { %v1124_v0 = vpop.permute.xlu0 %1123  ;;  %v996_v19 = vmul.f32 %v1712_v16, %v1704_v55 }
 0xa0a   :  { %1575 = vmatmul.msk.f32.gmra.mxu2 %vm200_vm8, %v1124_v0 }
 0xa10   :  { %1569 = vmatmul.msk.f32.gmra.mxu1 %vm200_vm8, %v1036_v13  ;;  %v1534_v13 = vld [vmem:[%s2337_s3 + $0xb0] sm:$0xff] }
 0xa11   :  { %v1636_v15 = vpop.permute.xlu0 %1635  ;;  %1258 = vmatpush.msra.mxu1 %v1534_v13 }
 0xa12   :  { %v1637_v17 = vunpack.i.l.bf16 %v1636_v15  ;;  %v1638_v18 = vunpack.i.h.bf16 %v1636_v15 }
 0xa13   :  { %1259 = vmatpush.msra.mxu1 %v1533_v14 }
 0xa14   :  { %1024 = vmatpush.msra.mxu0 %v1637_v17 }
 0xa15   :  { %1260 = vmatpush.msra.mxu1 %v1532_v59 }
 0xa16   :  { %1025 = vmatpush.msra.mxu0 %v1638_v18 }
 0xa17   :  { %1564 = vmatmul.msk.f32.vlgmr.msra.gmra.mxu0 %vm236_vm9, %v996_v19 }
 0xa19   :  { %v1641_v20 = vpop.permute.xlu1 %1640 }
 0xa1a   :  { %v1642_v22 = vunpack.i.l.bf16 %v1641_v20  ;;  %v1643_v23 = vunpack.i.h.bf16 %v1641_v20 }
 0xa1c   :  { %1112 = vmatpush.msra.mxu3 %v1642_v22 }
 0xa1e   :  { %1113 = vmatpush.msra.mxu3 %v1643_v23 }
 0xa37   :  { %v993_v24 = vpop.xlane.xlu2 %992 }
 0xa38   :  { %1713 = vrcp.f32 %v993_v24 }
 0xa3e   :  { %v1714_v26 = vpop.eup %1713 }
 0xa3f   :  { %v997_v27 = vmul.f32 %v1714_v26, %v1706_v61 }
 0xa41   :  { %1565 = vmatmul.msk.f32.gmra.mxu0 %vm236_vm9, %v997_v27 }
 0xa75   :  { %v2190_v8 = vpop.f32.mrf.mxu1 }
 0xa7d   :  { %v2192_v28 = vpop.f32.mrf.mxu1 }
 0xa85   :  { %v1066_v29 = vpop.f32.mrf.mxu1  ;;  %v1154_v30 = vpop.f32.mrf.mxu2 }
 0xa86   :  { %v1067_v31 = vadd.f32 %v1066_v29, %v1963_v21  ;;  %v1155_v32 = vadd.f32 %v1154_v30, %v1963_v21 }
 0xa88   :  { %v1072_v33 = vmul.f32 1.442695, %v1067_v31  ;;  %v1160_v35 = vmul.f32 1.442695, %v1155_v32 }
 0xa8a   :  { %1715 = vpow2.f32 %v1072_v33 }
 0xa8b   :  { %1717 = vpow2.f32 %v1160_v35 }
 0xa8d   :  { %v1069_v36 = vpop.f32.mrf.mxu1  ;;  %v1157_v39 = vpop.f32.mrf.mxu2 }
 0xa8e   :  { %v1070_v37 = vadd.f32 %v1069_v36, %v1969_v25  ;;  %v1158_v6 = vadd.f32 %v1157_v39, %v1969_v25 }
 0xa90   :  { %v1716_v1 = vpop.eup %1715  ;;  %v1074_v42 = vmul.f32 1.442695, %v1070_v37  ;;  %v1162_v46 = vmul.f32 1.442695, %v1158_v6 }
 0xa91   :  { %v1718_v43 = vpop.eup %1717  ;;  %v1076_v44 = vsel %vm236_vm9, %v1716_v1, 0.0 }
 0xa92   :  { %1719 = vpow2.f32 %v1074_v42  ;;  %v1164_v45 = vsel %vm236_vm9, %v1718_v43, 0.0  ;;  %1077 = vadd.xlane.f32.xlu0 %v1076_v44 }
 0xa93   :  { %1165 = vadd.xlane.f32.xlu2 %v1164_v45  ;;  %1721 = vpow2.f32 %v1162_v46  ;;  %v753_v46 = vld [vmem:[#allocation2 + $0x70] sm:$0xff] }
 0xa94   :  { %v1027_v21 = vpop.f32.mrf.mxu0 }
 0xa95   :  { %1211 = vrot.lane.b32.xlu1 %v1027_v21, %s1824_s10  ;;  %v754_v21 = vld [vmem:[#allocation2 + $0x78] sm:$0xff] }
 0xa96   :  { %1346 = vmatpush.msrb.mxu3 %v754_v21 }
 0xa98   :  { %v1720_v47 = vpop.eup %1719  ;;  %1347 = vmatpush.msrb.mxu3 %v753_v46 }
 0xa99   :  { %v1079_v48 = vsel %vm236_vm9, %v1720_v47, 0.0  ;;  %v1722_v49 = vpop.eup %1721 }
 0xa9a   :  { %v1167_v50 = vsel %vm236_vm9, %v1722_v49, 0.0 }
 0xa9b   :  { %1080 = vadd.xlane.f32.xlu2 %v1079_v48  ;;  %v751_v48 = vld [vmem:[#allocation2 + $0x60] sm:$0xff] }
 0xaa3   :  { %1168 = vadd.xlane.f32.xlu2 %v1167_v50 }
 0xaa6   :  { %1645 = vrot.lane.b32.xlu0 %v2143_v7, %s1836_s28 }
 0xabe   :  { %v1030_v25 = vpop.f32.mrf.mxu0 }
 0xabf   :  { %1213 = vrot.lane.b32.xlu1 %v1030_v25, %s1824_s10 }
 0xb05   :  { %v1078_v51 = vpop.xlane.xlu0 %1077 }
 0xb06   :  { %v1166_v52 = vpop.xlane.xlu2 %1165  ;;  %1723 = vrcp.f32 %v1078_v51  ;;  %v1551_v51 = vld [vmem:[%s2337_s3 + $0x138] sm:$0xff] }
 0xb07   :  { %v1212_v0 = vpop.permute.xlu1 %1211  ;;  %1375 = vmatpush.msrb.mxu2 %v1551_v51 }
 0xb08   :  { %v1233_v16 = vsel %vm200_vm8, %v2190_v8, %v1212_v0  ;;  %v1270_v8 = vperm.slane %v2109_v40, 1 }
 0xb0c   :  { %v1724_v53 = vpop.eup %1723 }
 0xb0d   :  { %v1084_v54 = vmul.f32 %v1724_v53, %v1716_v1 }
 0xb0e   :  { %v1081_v55 = vpop.xlane.xlu2 %1080 }
 0xb0f   :  { %1725 = vrcp.f32 %v1081_v55  ;;  %1570 = vmatmul.msk.f32.vlgmr.msra.gmra.mxu3 %vm236_vm9, %v1084_v54  ;;  %v1548_v55 = vld [vmem:[%s2337_s3 + $0x120] sm:$0xff] }
 0xb10   :  { %1727 = vrcp.f32 %v1166_v52  ;;  %v1549_v52 = vld [vmem:[%s2337_s3 + $0x128] sm:$0xff] }
 0xb15   :  { %v1726_v56 = vpop.eup %1725 }
 0xb16   :  { %v1085_v57 = vmul.f32 %v1726_v56, %v1720_v47  ;;  %v1169_v58 = vpop.xlane.xlu2 %1168  ;;  %v1728_v7 = vpop.eup %1727  ;;  %v752_v47 = vld [vmem:[#allocation2 + $0x68] sm:$0xff] }
 0xb17   :  { %1729 = vrcp.f32 %v1169_v58  ;;  %v1172_v63 = vmul.f32 %v1728_v7, %v1718_v43  ;;  %1348 = vmatpush.msrb.mxu3 %v752_v47 }
 0xb18   :  { %1571 = vmatmul.msk.f32.gmra.mxu3 %vm236_vm9, %v1085_v57  ;;  %v1646_v60 = vpop.permute.xlu0 %1645 }
 0xb19   :  { %v1647_v61 = vunpack.i.l.bf16 %v1646_v60  ;;  %v1648_v62 = vunpack.i.h.bf16 %v1646_v60  ;;  %1349 = vmatpush.msrb.mxu3 %v751_v48 }
 0xb1b   :  { %1200 = vmatpush.msrb.mxu0 %v1647_v61 }
 0xb1d   :  { %1201 = vmatpush.msrb.mxu0 %v1648_v62  ;;  %v1730_v3 = vpop.eup %1729 }
 0xb1e   :  { %1576 = vmatmul.msk.f32.vlgmr.msrb.gmra.mxu0 %vm236_vm9, %v1172_v63  ;;  %v1173_v4 = vmul.f32 %v1730_v3, %v1722_v49 }
 0xb26   :  { %1577 = vmatmul.msk.f32.gmra.mxu0 %vm236_vm9, %v1173_v4 }
 0xb31   :  { %v1214_v17 = vpop.permute.xlu1 %1213 }
 0xb32   :  { %v1234_v22 = vsel %vm200_vm8, %v2192_v28, %v1214_v17 }
 0xb92   :  { %v1115_v5 = vpop.f32.mrf.mxu3 }
 0xb93   :  { %1219 = vrot.lane.b32.xlu2 %v1115_v5, %s1837_s30 }
 0xb9b   :  { %v1203_v9 = vpop.f32.mrf.mxu0  ;;  %v1118_v10 = vpop.f32.mrf.mxu3 }
 0xb9c   :  { %1227 = vrot.lane.b32.xlu0 %v1203_v9, %s1838_s7 }
 0xba3   :  { %v1206_v2 = vpop.f32.mrf.mxu0 }
 0xba4   :  { %1221 = vrot.lane.b32.xlu0 %v1118_v10, %s1837_s30  ;;  %1229 = vrot.lane.b32.xlu1 %v1206_v2, %s1838_s7 }
 0xbed   :  { %v1220_v15 = vpop.permute.xlu2 %1219 }
 0xbee   :  { %v1235_v18 = vsel %vm236_vm9, %v1233_v16, %v1220_v15 }
 0xc0e   :  { %v1228_v19 = vpop.permute.xlu0 %1227 }
 0xc0f   :  { %v1237_v20 = vsel %vm574_vm10, %v1235_v18, %v1228_v19  ;;  %v1547_v19 = vld [vmem:[%s2337_s3 + $0x118] sm:$0xff] }
 0xc10   :  { %1578 = vmatmul.msk.f32.vlgmr.msra.gmra.mxu1 %vm103_vm0, %v1237_v20  ;;  %v1546_v20 = vld [vmem:[%s2337_s3 + $0x110] sm:$0xff] }
 0xc16   :  { %v1222_v23 = vpop.permute.xlu0 %1221  ;;  %v1230_v24 = vpop.permute.xlu1 %1229 }
 0xc17   :  { %v1236_v26 = vsel %vm236_vm9, %v1234_v22, %v1222_v23  ;;  %v1545_v22 = vld [vmem:[%s2337_s3 + $0x108] sm:$0xff]  ;;  %v1544_v23 = vld [vmem:[%s2337_s3 + $0x100] sm:$0xff] }
 0xc18   :  { %v1238_v27 = vsel %vm574_vm10, %v1236_v26, %v1230_v24  ;;  %v1543_v24 = vld [vmem:[%s2337_s3 + $0xf8] sm:$0xff]  ;;  %v1542_v26 = vld [vmem:[%s2337_s3 + $0xf0] sm:$0xff] }
 0xc19   :  { %1579 = vmatmul.msk.f32.gmra.mxu1 %vm103_vm0, %v1238_v27  ;;  %v1541_v27 = vld [vmem:[%s2337_s3 + $0xe8] sm:$0xff] }
 0xc8d   :  { %v1262_v29 = vpop.f32.mrf.mxu1 }
 0xc8e   :  { %v1268_v30 = vadd.f32 %v1262_v29, %v2100_v34  ;;  %v1539_v29 = vld [vmem:[%s2337_s3 + $0xd8] sm:$0xff] }
 0xc90   :  { %v2238_v31 = vadd.f32 %v1270_v8, %v1268_v30  ;;  %v1538_v30 = vld [vmem:[%s2337_s3 + $0xd0] sm:$0xff] }
 0xc92   :  { %v1273_v32 = vsel %vm103_vm0, %v2238_v31, 0.0 }
 0xc93   :  { %1274 = vadd.xlane.f32.xlu0 %v1273_v32  ;;  %v1537_v32 = vld [vmem:[%s2337_s3 + $0xc8] sm:$0xff] }
 0xc96   :  { %v1265_v28 = vpop.f32.mrf.mxu1 }
 0xc97   :  { %v1269_v33 = vadd.f32 %v1265_v28, %v2105_v38  ;;  %v1536_v28 = vld [vmem:[%s2337_s3 + $0xc0] sm:$0xff] }
 0xc99   :  { %v2243_v35 = vadd.f32 %v1270_v8, %v1269_v33  ;;  %v1327_v33 = vperm.slane %v2109_v40, 3 }
 0xc9b   :  { %v1276_v36 = vsel %vm103_vm0, %v2243_v35, 0.0 }
 0xc9c   :  { %1277 = vadd.xlane.f32.xlu1 %v1276_v36 }
 0xcb5   :  { %1322 = vrot.lane.b32.xlu1 %v2112_v41, %s1839_s15 }
 0xd06   :  { %v1275_v37 = vpop.xlane.xlu0 %1274 }
 0xd07   :  { %v1279_v34 = vmul.f32 %v1275_v37, %v1909_v12 }
 0xd09   :  { %v1281_v39 = vsub.f32 %v2238_v31, %v1279_v34 }
 0xd0b   :  { %v1283_v1 = vmul.f32 %v1281_v39, %v1281_v39 }
 0xd0d   :  { %v1285_v42 = vsel %vm103_vm0, %v1283_v1, 0.0 }
 0xd0e   :  { %1286 = vadd.xlane.f32.xlu2 %v1285_v42 }
 0xd0f   :  { %v1278_v43 = vpop.xlane.xlu1 %1277 }
 0xd10   :  { %v1280_v38 = vmul.f32 %v1278_v43, %v1909_v12 }
 0xd12   :  { %v1282_v6 = vsub.f32 %v2243_v35, %v1280_v38 }
 0xd14   :  { %v1284_v44 = vmul.f32 %v1282_v6, %v1282_v6 }
 0xd16   :  { %v1288_v45 = vsel %vm103_vm0, %v1284_v44, 0.0 }
 0xd17   :  { %1289 = vadd.xlane.f32.xlu0 %v1288_v45 }
 0xd26   :  { %1317 = vrot.lane.b32.xlu2 %v2112_v41, %s1820_s29  ;;  %v1550_v41 = vld [vmem:[%s2337_s3 + $0x130] sm:$0xff] }
 0xd27   :  { %1376 = vmatpush.msrb.mxu2 %v1550_v41  ;;  %v1323_v2 = vpop.permute.xlu1 %1322 }
 0xd29   :  { %1377 = vmatpush.msrb.mxu2 %v1549_v52 }
 0xd2b   :  { %1401 = vrot.lane.b32.xlu0 %v1270_v8, %s1827_s17  ;;  %1378 = vmatpush.msrb.mxu2 %v1548_v55  ;;  %v1540_v8 = vld [vmem:[%s2337_s3 + $0xe0] sm:$0xff] }
 0xd2d   :  { %1379 = vmatpush.msrb.mxu2 %v1547_v19 }
 0xd2f   :  { %1380 = vmatpush.msrb.mxu2 %v1546_v20 }
 0xd31   :  { %1381 = vmatpush.msrb.mxu2 %v1545_v22 }
 0xd33   :  { %1382 = vmatpush.msrb.mxu2 %v1544_v23 }
 0xd35   :  { %1383 = vmatpush.msrb.mxu2 %v1543_v24 }
 0xd37   :  { %1384 = vmatpush.msrb.mxu2 %v1542_v26 }
 0xd39   :  { %1385 = vmatpush.msrb.mxu2 %v1541_v27 }
 0xd3b   :  { %1386 = vmatpush.msrb.mxu2 %v1540_v8 }
 0xd3d   :  { %1387 = vmatpush.msrb.mxu2 %v1539_v29 }
 0xd3f   :  { %1388 = vmatpush.msrb.mxu2 %v1538_v30 }
 0xd41   :  { %1389 = vmatpush.msrb.mxu2 %v1537_v32 }
 0xd43   :  { %1390 = vmatpush.msrb.mxu2 %v1536_v28 }
 0xd81   :  { %v1287_v49 = vpop.xlane.xlu2 %1286 }
 0xd82   :  { %v1291_v50 = vmul.f32 %v1287_v49, %v1909_v12 }
 0xd84   :  { %v1293_v25 = vadd.f32 1e-05, %v1291_v50 }
 0xd86   :  { %1731 = vrsqrt.f32 %v1293_v25  ;;  %vm1301_vm9 = vweird.f32 %v1293_v25 }
 0xd89   :  { %v1318_v5 = vpop.permute.xlu2 %1317 }
 0xd8a   :  { %v1290_v53 = vpop.xlane.xlu0 %1289 }
 0xd8b   :  { %v1292_v54 = vmul.f32 %v1290_v53, %v1909_v12 }
 0xd8c   :  { %v1732_v56 = vpop.eup %1731 }
 0xd8d   :  { %v1296_v57 = vmul.f32 %v1732_v56, %v1293_v25  ;;  %v1294_v58 = vadd.f32 1e-05, %v1292_v54  ;;  %vm1302_vm8 = vweird.f32 %v1732_v56 }
 0xd8e   :  { %vm1303_vm10 = vmor %vm1301_vm9, %vm1302_vm8 }
 0xd8f   :  { %v1297_v60 = vmul.f32 %v1732_v56, %v1296_v57  ;;  %1733 = vrsqrt.f32 %v1294_v58  ;;  %vm1311_vm12 = vweird.f32 %v1294_v58 }
 0xd91   :  { %v1298_v7 = vmul.f32 0.5, %v1297_v60 }
 0xd93   :  { %v1299_v61 = vsub.f32 1.5, %v1298_v7 }
 0xd95   :  { %v1734_v62 = vpop.eup %1733  ;;  %v1300_v63 = vmul.f32 %v1732_v56, %v1299_v61 }
 0xd96   :  { %v1306_v3 = vmul.f32 %v1734_v62, %v1294_v58  ;;  %vm1312_vm11 = vweird.f32 %v1734_v62 }
 0xd97   :  { %v1304_v4 = vsel %vm1303_vm10, %v1732_v56, %v1300_v63  ;;  %vm1313_vm13 = vmor %vm1311_vm12, %vm1312_vm11 }
 0xd98   :  { %v1307_v9 = vmul.f32 %v1734_v62, %v1306_v3  ;;  %v1315_v10 = vmul.f32 %v1304_v4, %v1281_v39 }
 0xd9a   :  { %v1308_v11 = vmul.f32 0.5, %v1307_v9  ;;  %v1320_v13 = vmul.f32 %v1318_v5, %v1315_v10 }
 0xd9c   :  { %v1309_v14 = vsub.f32 1.5, %v1308_v11  ;;  %v1325_v59 = vadd.f32 %v1323_v2, %v1320_v13 }
 0xd9d   :  { %v1402_v54 = vpop.permute.xlu0 %1401 }
 0xd9e   :  { %v1310_v0 = vmul.f32 %v1734_v62, %v1309_v14  ;;  %1580 = vmatmul.msk.f32.vlgmr.msrb.gmra.mxu3 %vm103_vm0, %v1325_v59  ;;  %v1409_v14 = vld [vmem:[#allocation6 + $0x18] sm:$0xff]  ;;  %v1408_v59 = vld [vmem:[#allocation6 + $0x10] sm:$0xff] }
 0xd9f   :  { %1483 = vmatpush.msra.mxu0 %v1409_v14 }
 0xda0   :  { %v1314_v15 = vsel %vm1313_vm13, %v1734_v62, %v1310_v0  ;;  %v2315_v62 = vld [vmem:[#allocation6 + $0x20] sm:$0x3]  ;;  %v1407_v0 = vld [vmem:[#allocation6 + $0x8] sm:$0xff] }
 0xda1   :  { %v1316_v16 = vmul.f32 %v1314_v15, %v1282_v6  ;;  %v1455_v63 = vperm.slane %v2315_v62, 0  ;;  %1484 = vmatpush.msra.mxu0 %v1408_v59  ;;  %v1406_v15 = vld [vmem:[#allocation6] sm:$0xff] }
 0xda3   :  { %v1321_v17 = vmul.f32 %v1318_v5, %v1316_v16  ;;  %1485 = vmatpush.msra.mxu0 %v1407_v0 }
 0xda5   :  { %v1326_v18 = vadd.f32 %v1323_v2, %v1321_v17  ;;  %1486 = vmatpush.msra.mxu0 %v1406_v15 }
 0xda7   :  { %1581 = vmatmul.msk.f32.gmra.mxu3 %vm103_vm0, %v1326_v18 }
 0xe21   :  { %v1351_v36 = vpop.f32.mrf.mxu3 }
 0xe22   :  { %v1352_v37 = vadd.f32 %v1351_v36, %v1327_v33 }
 0xe24   :  { %v1359_v34 = vmul.f32 %v1352_v37, %v1352_v37  ;;  %v1357_v48 = vmul.f32 0.5, %v1352_v37 }
 0xe26   :  { %v1361_v39 = vmul.f32 %v1359_v34, %v1352_v37 }
 0xe28   :  { %v1363_v1 = vmul.f32 0.044715, %v1361_v39 }
 0xe2a   :  { %v1365_v42 = vadd.f32 %v1363_v1, %v1352_v37  ;;  %v1354_v43 = vpop.f32.mrf.mxu3 }
 0xe2b   :  { %v1355_v38 = vadd.f32 %v1354_v43, %v1327_v33 }
 0xe2c   :  { %v1367_v6 = vmul.f32 0.7978846, %v1365_v42 }
 0xe2d   :  { %v1360_v44 = vmul.f32 %v1355_v38, %v1355_v38  ;;  %v1358_v51 = vmul.f32 0.5, %v1355_v38 }
 0xe2e   :  { %1735 = vtanh.f32 %v1367_v6 }
 0xe2f   :  { %v1362_v45 = vmul.f32 %v1360_v44, %v1355_v38 }
 0xe31   :  { %v1364_v21 = vmul.f32 0.044715, %v1362_v45  ;;  %v1464_v45 = vperm.slane %v2315_v62, 1 }
 0xe33   :  { %v1366_v46 = vadd.f32 %v1364_v21, %v1355_v38 }
 0xe34   :  { %v1736_v47 = vpop.eup %1735 }
 0xe35   :  { %v1371_v49 = vadd.f32 1.0, %v1736_v47  ;;  %v1368_v50 = vmul.f32 0.7978846, %v1366_v46 }
 0xe37   :  { %v1373_v25 = vmul.f32 %v1371_v49, %v1357_v48  ;;  %1737 = vtanh.f32 %v1368_v50 }
 0xe39   :  { %1391 = vmatmul.f32.vlgmr.msrb.gmra.mxu2 %v1373_v25 }
 0xe3d   :  { %v1738_v40 = vpop.eup %1737 }
 0xe3e   :  { %v1372_v41 = vadd.f32 1.0, %v1738_v40 }
 0xe40   :  { %v1374_v52 = vmul.f32 %v1372_v41, %v1358_v51 }
 0xe42   :  { %1394 = vmatmul.f32.gmra.mxu2 %v1374_v52 }
 0xebc   :  { %v1392_v53 = vpop.f32.mrf.mxu2 }
 0xebd   :  { %v1398_v55 = vadd.f32 %v1392_v53, %v2238_v31 }
 0xebf   :  { %v1404_v56 = vadd.f32 %v1402_v54, %v1398_v55 }
 0xec1   :  { %v1411_v57 = vsel %vm103_vm0, %v1404_v56, 0.0 }
 0xec2   :  { %1412 = vadd.xlane.f32.xlu2 %v1411_v57 }
 0xec5   :  { %v1395_v58 = vpop.f32.mrf.mxu2 }
 0xec6   :  { %v1399_v60 = vadd.f32 %v1395_v58, %v2243_v35 }
 0xec8   :  { %v1405_v7 = vadd.f32 %v1402_v54, %v1399_v60 }
 0xeca   :  { %v1414_v61 = vsel %vm103_vm0, %v1405_v7, 0.0 }
 0xecb   :  { %1415 = vadd.xlane.f32.xlu0 %v1414_v61 }
 0xedf   :  { %1459 = vrot.lane.b32.xlu0 %v1455_v63, %s1827_s17 }
 0xf35   :  { %v1413_v3 = vpop.xlane.xlu2 %1412 }
 0xf36   :  { %v1417_v31 = vmul.f32 %v1413_v3, %v1909_v12 }
 0xf38   :  { %v1419_v4 = vsub.f32 %v1404_v56, %v1417_v31 }
 0xf3a   :  { %v1421_v5 = vmul.f32 %v1419_v4, %v1419_v4 }
 0xf3c   :  { %v1423_v9 = vsel %vm103_vm0, %v1421_v5, 0.0 }
 0xf3d   :  { %1424 = vadd.xlane.f32.xlu1 %v1423_v9 }
 0xf3e   :  { %v1416_v10 = vpop.xlane.xlu0 %1415 }
 0xf3f   :  { %v1418_v35 = vmul.f32 %v1416_v10, %v1909_v12 }
 0xf41   :  { %v1420_v2 = vsub.f32 %v1405_v7, %v1418_v35 }
 0xf43   :  { %v1422_v11 = vmul.f32 %v1420_v2, %v1420_v2 }
 0xf45   :  { %v1426_v13 = vsel %vm103_vm0, %v1422_v11, 0.0 }
 0xf46   :  { %1427 = vadd.xlane.f32.xlu2 %v1426_v13 }
 0xf51   :  { %v1460_v37 = vpop.permute.xlu0 %1459 }
 0xfb0   :  { %v1425_v16 = vpop.xlane.xlu1 %1424 }
 0xfb1   :  { %v1429_v17 = vmul.f32 %v1425_v16, %v1909_v12 }
 0xfb3   :  { %v1431_v18 = vadd.f32 1e-05, %v1429_v17 }
 0xfb5   :  { %1739 = vrsqrt.f32 %v1431_v18  ;;  %vm1439_vm15 = vweird.f32 %v1431_v18 }
 0xfb9   :  { %v1428_v19 = vpop.xlane.xlu2 %1427 }
 0xfba   :  { %v1430_v20 = vmul.f32 %v1428_v19, %v1909_v12 }
 0xfbb   :  { %v1740_v22 = vpop.eup %1739 }
 0xfbc   :  { %v1434_v23 = vmul.f32 %v1740_v22, %v1431_v18  ;;  %v1432_v24 = vadd.f32 1e-05, %v1430_v20  ;;  %vm1440_vm14 = vweird.f32 %v1740_v22 }
 0xfbd   :  { %vm1441_vm1 = vmor %vm1439_vm15, %vm1440_vm14 }
 0xfbe   :  { %v1435_v26 = vmul.f32 %v1740_v22, %v1434_v23  ;;  %1741 = vrsqrt.f32 %v1432_v24  ;;  %vm1449_vm3 = vweird.f32 %v1432_v24 }
 0xfc0   :  { %v1436_v27 = vmul.f32 0.5, %v1435_v26 }
 0xfc2   :  { %v1437_v8 = vsub.f32 1.5, %v1436_v27 }
 0xfc4   :  { %v1742_v29 = vpop.eup %1741  ;;  %v1438_v30 = vmul.f32 %v1740_v22, %v1437_v8 }
 0xfc5   :  { %v1444_v32 = vmul.f32 %v1742_v29, %v1432_v24  ;;  %vm1450_vm2 = vweird.f32 %v1742_v29 }
 0xfc6   :  { %v1442_v28 = vsel %vm1441_vm1, %v1740_v22, %v1438_v30  ;;  %vm1451_vm4 = vmor %vm1449_vm3, %vm1450_vm2 }
 0xfc7   :  { %v1445_v33 = vmul.f32 %v1742_v29, %v1444_v32  ;;  %v1453_v36 = vmul.f32 %v1442_v28, %v1419_v4 }
 0xfc9   :  { %v1446_v34 = vmul.f32 0.5, %v1445_v33  ;;  %v1456_v39 = vmul.f32 %v1455_v63, %v1453_v36 }
 0xfcb   :  { %v1447_v12 = vsub.f32 1.5, %v1446_v34  ;;  %v1462_v1 = vadd.f32 %v1460_v37, %v1456_v39 }
 0xfcd   :  { %v1448_v42 = vmul.f32 %v1742_v29, %v1447_v12  ;;  %1582 = vmatmul.msk.f32.vlgmr.msra.gmra.mxu0 %vm103_vm0, %v1462_v1 }
 0xfcf   :  { %v1452_v43 = vsel %vm1451_vm4, %v1742_v29, %v1448_v42 }
 0xfd0   :  { %v1454_v38 = vmul.f32 %v1452_v43, %v1420_v2 }
 0xfd2   :  { %v1457_v6 = vmul.f32 %v1455_v63, %v1454_v38 }
 0xfd4   :  { %v1463_v44 = vadd.f32 %v1460_v37, %v1457_v6 }
 0xfd6   :  { %1583 = vmatmul.msk.f32.gmra.mxu0 %vm103_vm0, %v1463_v44 }
0x104a   :  { %v1488_v21 = vpop.f32.mrf.mxu0 }
0x104b   :  { %v1489_v46 = vadd.f32 %v1488_v21, %v1464_v45 }
0x104d   :  { %1494 = vst [vmem:[%s2340_s6] sm:$0xff] %v1489_v46 }
0x1053   :  { %v1491_v47 = vpop.f32.mrf.mxu0 }
0x1054   :  { %v1492_v48 = vadd.f32 %v1491_v47, %v1464_v45 }
0x1056   :  { %1495 = vst [vmem:[%s2340_s6 + $0x8] sm:$0xff] %v1492_v48 }
0x1057   :  { %1500 = vsyncpa [#allocation3], 1 }
0x1058   :  { %1501 = vsyncpa [#allocation5], 1 }

</bundles_post_ra>
